<compile_context>
chip_gen: v7x
topology: tpu7x:2x2x1
jax: 0.10.0
libtpu: 0.0.40
codegen_flags: <defaults>
</compile_context>

<pallas_src>
import jax
import jax.numpy as jnp
from jax.experimental import pallas as pl
from jax.experimental.pallas import tpu as pltpu

IN_FEATURES = 2
HIDDEN = 500
HIDDEN_PAD = 512          # next multiple of 128
CHUNK = 128               # hidden-dim streaming chunk (4 chunks of 128)
OUT_FEATURES = 1
NEG_SLOPE = 0.01          # F.leaky_relu default negative_slope


def _leaky_relu(x):
    # exact for negative_slope < 1
    return jnp.maximum(x, NEG_SLOPE * x)


def fcnet_kernel(x_ref, w1_ref, b1_ref, w2_ref, b2_ref, o_ref):
    # x_ref : (2, TILE_B)          batch on lanes
    # w1_ref: (HIDDEN_PAD, 2)      hidden on sublanes
    # b1_ref: (HIDDEN_PAD, 1)
    # w2_ref: (HIDDEN_PAD, 1)
    # b2_ref: (1, 1) in SMEM
    # o_ref : (1, TILE_B)          lane-dense output
    x0 = x_ref[0:1, :]            # (1, TILE_B)
    x1 = x_ref[1:2, :]            # (1, TILE_B)

    acc = jnp.zeros(o_ref.shape, jnp.float32)   # (1, TILE_B)

    # Stream the hidden dimension in chunks of 128 rows: the full (512, TILE_B)
    # hidden activation never lives in VMEM at once.
    for c in range(HIDDEN_PAD // CHUNK):
        lo = c * CHUNK
        w1c0 = w1_ref[lo:lo + CHUNK, 0:1]        # (CHUNK, 1)
        w1c1 = w1_ref[lo:lo + CHUNK, 1:2]        # (CHUNK, 1)
        b1c = b1_ref[lo:lo + CHUNK, :]           # (CHUNK, 1)
        # fc1 as VPU broadcast FMA (outer-product style), no MXU:
        hc = w1c0 * x0 + w1c1 * x1 + b1c         # (CHUNK, TILE_B)
        hc = _leaky_relu(hc)
        # fc2 partial: elementwise scale + sublane reduction (XLU), no MXU:
        w2c = w2_ref[lo:lo + CHUNK, :]           # (CHUNK, 1)
        acc = acc + jnp.sum(hc * w2c, axis=0, keepdims=True)

    y = acc + b2_ref[0, 0]
    o_ref[...] = _leaky_relu(y).astype(o_ref.dtype)


def fcnet_forward(x, w1t_pad, b1_pad, w2_pad, b2, *, tile_b=512):
    """x: (B, 2) float32 -> (B, 1) float32."""
    assert tile_b % 128 == 0
    B = x.shape[0]

    # pad batch to a lane-friendly multiple of the tile
    b_pad = ((B + 127) // 128) * 128
    tile_b = min(tile_b, b_pad)
    b_pad = ((b_pad + tile_b - 1) // tile_b) * tile_b
    num_tiles = b_pad // tile_b

    xp = jnp.zeros((b_pad, IN_FEATURES), x.dtype).at[:B, :].set(x)
    xt = xp.T                                     # (2, b_pad): batch on lanes

    flops = 6 * b_pad * HIDDEN_PAD                # 2 FMA + 1 mul + 1 add per hidden elem (approx)
    bytes_accessed = (xt.size + b_pad
                      + w1t_pad.size + b1_pad.size + w2_pad.size + 1) * 4

    out = pl.pallas_call(
        fcnet_kernel,
        out_shape=jax.ShapeDtypeStruct((1, b_pad), jnp.float32),
        grid=(num_tiles,),
        in_specs=[
            # x tile: batch-blocked, lane-dense
            pl.BlockSpec((IN_FEATURES, tile_b), lambda i: (0, i)),
            # weights / biases: constant block -> stay VMEM-resident across steps
            pl.BlockSpec((HIDDEN_PAD, IN_FEATURES), lambda i: (0, 0)),
            pl.BlockSpec((HIDDEN_PAD, 1), lambda i: (0, 0)),
            pl.BlockSpec((HIDDEN_PAD, 1), lambda i: (0, 0)),
            # scalar bias in SMEM
            pl.BlockSpec(memory_space=pltpu.MemorySpace.SMEM),
        ],
        out_specs=pl.BlockSpec((1, tile_b), lambda i: (0, i)),
        compiler_params=pltpu.CompilerParams(
            dimension_semantics=("parallel",)),
        cost_estimate=pl.CostEstimate(
            flops=flops, transcendentals=0, bytes_accessed=bytes_accessed),
    )(xt, w1t_pad, b1_pad, w2_pad, b2)

    return out[0, :B].reshape(B, OUT_FEATURES)


def init_params(key):
    """PyTorch-Linear-style init: U(-1/sqrt(fan_in), 1/sqrt(fan_in))."""
    k1, k2, k3, k4 = jax.random.split(key, 4)
    bound1 = 1.0 / jnp.sqrt(float(IN_FEATURES))
    bound2 = 1.0 / jnp.sqrt(float(HIDDEN))

    w1 = jax.random.uniform(k1, (IN_FEATURES, HIDDEN), jnp.float32, -bound1, bound1)
    b1 = jax.random.uniform(k2, (HIDDEN,), jnp.float32, -bound1, bound1)
    w2 = jax.random.uniform(k3, (HIDDEN, OUT_FEATURES), jnp.float32, -bound2, bound2)
    b2 = jax.random.uniform(k4, (OUT_FEATURES,), jnp.float32, -bound2, bound2)

    # kernel layout: hidden on sublanes, zero-padded 500 -> 512 (inert rows)
    w1t_pad = jnp.zeros((HIDDEN_PAD, IN_FEATURES), jnp.float32).at[:HIDDEN, :].set(w1.T)
    b1_pad = jnp.zeros((HIDDEN_PAD, 1), jnp.float32).at[:HIDDEN, 0].set(b1)
    w2_pad = jnp.zeros((HIDDEN_PAD, 1), jnp.float32).at[:HIDDEN, :].set(w2)
    b2_k = b2.reshape(1, 1)
    return (w1t_pad, b1_pad, w2_pad, b2_k), (w1, b1, w2, b2)


def reference_forward(x, w1, b1, w2, b2):
    h = _leaky_relu(
        jnp.dot(x, w1, precision=jax.lax.Precision.HIGHEST,
                preferred_element_type=jnp.float32) + b1[None, :])
    y = jnp.dot(h, w2, precision=jax.lax.Precision.HIGHEST,
                preferred_element_type=jnp.float32) + b2[None, :]
    return _leaky_relu(y)


if __name__ == "__main__":
    key = jax.random.PRNGKey(0)
    kx, kp = jax.random.split(key)

    (w1t_pad, b1_pad, w2_pad, b2_k), (w1, b1, w2, b2) = init_params(kp)

    # small batch (module's forward takes (batch, 2)), single grid step
    B = 8
    x = jax.random.uniform(kx, (B, IN_FEATURES), jnp.float32) * 100.0
    out = jax.block_until_ready(fcnet_forward(x, w1t_pad, b1_pad, w2_pad, b2_k))
    ref = reference_forward(x, w1, b1, w2, b2)
    assert out.shape == (B, OUT_FEATURES)
    assert jnp.allclose(out, ref, atol=1e-2, rtol=1e-4), "mismatch vs reference (B=8)"

    # multi-tile path: non-multiple batch + grid of 3 tiles (exercises padding)
    B2 = 300
    x2 = jax.random.uniform(jax.random.PRNGKey(1), (B2, IN_FEATURES), jnp.float32) * 100.0
    out2 = jax.block_until_ready(
        fcnet_forward(x2, w1t_pad, b1_pad, w2_pad, b2_k, tile_b=128))
    ref2 = reference_forward(x2, w1, b1, w2, b2)
    assert out2.shape == (B2, OUT_FEATURES)
    assert jnp.allclose(out2, ref2, atol=1e-2, rtol=1e-4), "mismatch vs reference (B=300)"

    print("KERNEL_OK")
</pallas_src>

<mosaic_0001>
module attributes {stable_mosaic.version = 11 : i64} {
  func.func @fcnet_kernel(%arg0: i32, %arg1: memref<2x128xf32, #tpu.memory_space<vmem>>, %arg2: memref<512x2xf32, #tpu.memory_space<vmem>>, %arg3: memref<512x1xf32, #tpu.memory_space<vmem>>, %arg4: memref<512x1xf32, #tpu.memory_space<vmem>>, %arg5: memref<1x1xf32, #tpu.memory_space<smem>>, %arg6: memref<1x128xf32, #tpu.memory_space<vmem>>) attributes {dimension_semantics = [#tpu.dimension_semantics<parallel>], iteration_bounds = array<i64: 1>, scalar_prefetch = 0 : i64, scratch_operands = 0 : i64, tpu.core_type = #tpu.core_type<tc>, window_params = [{transform_indices = @transform_0, window_bounds = array<i64: 2, 128>}, {pipeline_mode = #tpu.pipeline_mode<synchronous>, transform_indices = @transform_1, window_bounds = array<i64: 512, 2>}, {pipeline_mode = #tpu.pipeline_mode<synchronous>, transform_indices = @transform_2, window_bounds = array<i64: 512, 1>}, {pipeline_mode = #tpu.pipeline_mode<synchronous>, transform_indices = @transform_3, window_bounds = array<i64: 512, 1>}, {transform_indices = @transform_4, window_bounds = array<i64: 1, 1>}, {transform_indices = @transform_5, window_bounds = array<i64: 1, 128>}]} {
    %c0 = arith.constant 0 : index
    %c0_0 = arith.constant 0 : index
    %0 = vector.load %arg1[%c0, %c0_0] : memref<2x128xf32, #tpu.memory_space<vmem>>, vector<1x128xf32>
    %c1 = arith.constant 1 : index
    %c0_1 = arith.constant 0 : index
    %1 = vector.load %arg1[%c1, %c0_1] : memref<2x128xf32, #tpu.memory_space<vmem>>, vector<1x128xf32>
    %cst = arith.constant 0.000000e+00 : f32
    %2 = vector.broadcast %cst : f32 to vector<1x128xf32>
    %c0_2 = arith.constant 0 : index
    %c0_3 = arith.constant 0 : index
    %3 = vector.load %arg2[%c0_2, %c0_3] : memref<512x2xf32, #tpu.memory_space<vmem>>, vector<128x1xf32>
    %c0_4 = arith.constant 0 : index
    %c1_5 = arith.constant 1 : index
    %4 = vector.load %arg2[%c0_4, %c1_5] : memref<512x2xf32, #tpu.memory_space<vmem>>, vector<128x1xf32>
    %c0_6 = arith.constant 0 : index
    %c0_7 = arith.constant 0 : index
    %5 = vector.load %arg3[%c0_6, %c0_7] : memref<512x1xf32, #tpu.memory_space<vmem>>, vector<128x1xf32>
    %6 = vector.broadcast %3 : vector<128x1xf32> to vector<128x128xf32>
    %7 = vector.broadcast %0 : vector<1x128xf32> to vector<128x128xf32>
    %8 = arith.mulf %6, %7 : vector<128x128xf32>
    %9 = vector.broadcast %4 : vector<128x1xf32> to vector<128x128xf32>
    %10 = vector.broadcast %1 : vector<1x128xf32> to vector<128x128xf32>
    %11 = arith.mulf %9, %10 : vector<128x128xf32>
    %12 = arith.addf %8, %11 : vector<128x128xf32>
    %13 = vector.broadcast %5 : vector<128x1xf32> to vector<128x128xf32>
    %14 = arith.addf %12, %13 : vector<128x128xf32>
    %cst_8 = arith.constant 0.00999999977 : f32
    %15 = vector.broadcast %cst_8 : f32 to vector<128x128xf32>
    %16 = arith.mulf %15, %14 : vector<128x128xf32>
    %17 = arith.maximumf %14, %16 : vector<128x128xf32>
    %c0_9 = arith.constant 0 : index
    %c0_10 = arith.constant 0 : index
    %18 = vector.load %arg4[%c0_9, %c0_10] : memref<512x1xf32, #tpu.memory_space<vmem>>, vector<128x1xf32>
    %19 = vector.broadcast %18 : vector<128x1xf32> to vector<128x128xf32>
    %20 = arith.mulf %17, %19 : vector<128x128xf32>
    %cst_11 = arith.constant dense<0.000000e+00> : vector<128xf32>
    %21 = vector.multi_reduction <add>, %20, %cst_11 [0] : vector<128x128xf32> to vector<128xf32>
    %22 = vector.shape_cast %21 : vector<128xf32> to vector<1x128xf32>
    %23 = arith.addf %2, %22 : vector<1x128xf32>
    %c128 = arith.constant 128 : index
    %c0_12 = arith.constant 0 : index
    %24 = vector.load %arg2[%c128, %c0_12] : memref<512x2xf32, #tpu.memory_space<vmem>>, vector<128x1xf32>
    %c128_13 = arith.constant 128 : index
    %c1_14 = arith.constant 1 : index
    %25 = vector.load %arg2[%c128_13, %c1_14] : memref<512x2xf32, #tpu.memory_space<vmem>>, vector<128x1xf32>
    %c128_15 = arith.constant 128 : index
    %c0_16 = arith.constant 0 : index
    %26 = vector.load %arg3[%c128_15, %c0_16] : memref<512x1xf32, #tpu.memory_space<vmem>>, vector<128x1xf32>
    %27 = vector.broadcast %24 : vector<128x1xf32> to vector<128x128xf32>
    %28 = vector.broadcast %0 : vector<1x128xf32> to vector<128x128xf32>
    %29 = arith.mulf %27, %28 : vector<128x128xf32>
    %30 = vector.broadcast %25 : vector<128x1xf32> to vector<128x128xf32>
    %31 = vector.broadcast %1 : vector<1x128xf32> to vector<128x128xf32>
    %32 = arith.mulf %30, %31 : vector<128x128xf32>
    %33 = arith.addf %29, %32 : vector<128x128xf32>
    %34 = vector.broadcast %26 : vector<128x1xf32> to vector<128x128xf32>
    %35 = arith.addf %33, %34 : vector<128x128xf32>
    %cst_17 = arith.constant 0.00999999977 : f32
    %36 = vector.broadcast %cst_17 : f32 to vector<128x128xf32>
    %37 = arith.mulf %36, %35 : vector<128x128xf32>
    %38 = arith.maximumf %35, %37 : vector<128x128xf32>
    %c128_18 = arith.constant 128 : index
    %c0_19 = arith.constant 0 : index
    %39 = vector.load %arg4[%c128_18, %c0_19] : memref<512x1xf32, #tpu.memory_space<vmem>>, vector<128x1xf32>
    %40 = vector.broadcast %39 : vector<128x1xf32> to vector<128x128xf32>
    %41 = arith.mulf %38, %40 : vector<128x128xf32>
    %cst_20 = arith.constant dense<0.000000e+00> : vector<128xf32>
    %42 = vector.multi_reduction <add>, %41, %cst_20 [0] : vector<128x128xf32> to vector<128xf32>
    %43 = vector.shape_cast %42 : vector<128xf32> to vector<1x128xf32>
    %44 = arith.addf %23, %43 : vector<1x128xf32>
    %c256 = arith.constant 256 : index
    %c0_21 = arith.constant 0 : index
    %45 = vector.load %arg2[%c256, %c0_21] : memref<512x2xf32, #tpu.memory_space<vmem>>, vector<128x1xf32>
    %c256_22 = arith.constant 256 : index
    %c1_23 = arith.constant 1 : index
    %46 = vector.load %arg2[%c256_22, %c1_23] : memref<512x2xf32, #tpu.memory_space<vmem>>, vector<128x1xf32>
    %c256_24 = arith.constant 256 : index
    %c0_25 = arith.constant 0 : index
    %47 = vector.load %arg3[%c256_24, %c0_25] : memref<512x1xf32, #tpu.memory_space<vmem>>, vector<128x1xf32>
    %48 = vector.broadcast %45 : vector<128x1xf32> to vector<128x128xf32>
    %49 = vector.broadcast %0 : vector<1x128xf32> to vector<128x128xf32>
    %50 = arith.mulf %48, %49 : vector<128x128xf32>
    %51 = vector.broadcast %46 : vector<128x1xf32> to vector<128x128xf32>
    %52 = vector.broadcast %1 : vector<1x128xf32> to vector<128x128xf32>
    %53 = arith.mulf %51, %52 : vector<128x128xf32>
    %54 = arith.addf %50, %53 : vector<128x128xf32>
    %55 = vector.broadcast %47 : vector<128x1xf32> to vector<128x128xf32>
    %56 = arith.addf %54, %55 : vector<128x128xf32>
    %cst_26 = arith.constant 0.00999999977 : f32
    %57 = vector.broadcast %cst_26 : f32 to vector<128x128xf32>
    %58 = arith.mulf %57, %56 : vector<128x128xf32>
    %59 = arith.maximumf %56, %58 : vector<128x128xf32>
    %c256_27 = arith.constant 256 : index
    %c0_28 = arith.constant 0 : index
    %60 = vector.load %arg4[%c256_27, %c0_28] : memref<512x1xf32, #tpu.memory_space<vmem>>, vector<128x1xf32>
    %61 = vector.broadcast %60 : vector<128x1xf32> to vector<128x128xf32>
    %62 = arith.mulf %59, %61 : vector<128x128xf32>
    %cst_29 = arith.constant dense<0.000000e+00> : vector<128xf32>
    %63 = vector.multi_reduction <add>, %62, %cst_29 [0] : vector<128x128xf32> to vector<128xf32>
    %64 = vector.shape_cast %63 : vector<128xf32> to vector<1x128xf32>
    %65 = arith.addf %44, %64 : vector<1x128xf32>
    %c384 = arith.constant 384 : index
    %c0_30 = arith.constant 0 : index
    %66 = vector.load %arg2[%c384, %c0_30] : memref<512x2xf32, #tpu.memory_space<vmem>>, vector<128x1xf32>
    %c384_31 = arith.constant 384 : index
    %c1_32 = arith.constant 1 : index
    %67 = vector.load %arg2[%c384_31, %c1_32] : memref<512x2xf32, #tpu.memory_space<vmem>>, vector<128x1xf32>
    %c384_33 = arith.constant 384 : index
    %c0_34 = arith.constant 0 : index
    %68 = vector.load %arg3[%c384_33, %c0_34] : memref<512x1xf32, #tpu.memory_space<vmem>>, vector<128x1xf32>
    %69 = vector.broadcast %66 : vector<128x1xf32> to vector<128x128xf32>
    %70 = vector.broadcast %0 : vector<1x128xf32> to vector<128x128xf32>
    %71 = arith.mulf %69, %70 : vector<128x128xf32>
    %72 = vector.broadcast %67 : vector<128x1xf32> to vector<128x128xf32>
    %73 = vector.broadcast %1 : vector<1x128xf32> to vector<128x128xf32>
    %74 = arith.mulf %72, %73 : vector<128x128xf32>
    %75 = arith.addf %71, %74 : vector<128x128xf32>
    %76 = vector.broadcast %68 : vector<128x1xf32> to vector<128x128xf32>
    %77 = arith.addf %75, %76 : vector<128x128xf32>
    %cst_35 = arith.constant 0.00999999977 : f32
    %78 = vector.broadcast %cst_35 : f32 to vector<128x128xf32>
    %79 = arith.mulf %78, %77 : vector<128x128xf32>
    %80 = arith.maximumf %77, %79 : vector<128x128xf32>
    %c384_36 = arith.constant 384 : index
    %c0_37 = arith.constant 0 : index
    %81 = vector.load %arg4[%c384_36, %c0_37] : memref<512x1xf32, #tpu.memory_space<vmem>>, vector<128x1xf32>
    %82 = vector.broadcast %81 : vector<128x1xf32> to vector<128x128xf32>
    %83 = arith.mulf %80, %82 : vector<128x128xf32>
    %cst_38 = arith.constant dense<0.000000e+00> : vector<128xf32>
    %84 = vector.multi_reduction <add>, %83, %cst_38 [0] : vector<128x128xf32> to vector<128xf32>
    %85 = vector.shape_cast %84 : vector<128xf32> to vector<1x128xf32>
    %86 = arith.addf %65, %85 : vector<1x128xf32>
    %c0_39 = arith.constant 0 : index
    %c0_40 = arith.constant 0 : index
    %87 = memref.load %arg5[%c0_39, %c0_40] : memref<1x1xf32, #tpu.memory_space<smem>>
    %88 = vector.broadcast %87 : f32 to vector<1x128xf32>
    %89 = arith.addf %86, %88 : vector<1x128xf32>
    %cst_41 = arith.constant 0.00999999977 : f32
    %90 = vector.broadcast %cst_41 : f32 to vector<1x128xf32>
    %91 = arith.mulf %90, %89 : vector<1x128xf32>
    %92 = arith.maximumf %89, %91 : vector<1x128xf32>
    %c0_42 = arith.constant 0 : index
    %c0_43 = arith.constant 0 : index
    %93 = vector.load %arg6[%c0_42, %c0_43] : memref<1x128xf32, #tpu.memory_space<vmem>>, vector<1x128xf32>
    tpu.vector_store %arg6[%c0_42, %c0_43], %92 {strides = array<i32>} : memref<1x128xf32, #tpu.memory_space<vmem>>, vector<1x128xf32>,
    return
  }
  func.func @transform_0(%arg0: i32) -> (i32, i32) {
    %c0_i32 = arith.constant 0 : i32
    %c0_i32_0 = arith.constant 0 : i32
    return %c0_i32, %arg0 : i32, i32
  }
  func.func @transform_1(%arg0: i32) -> (i32, i32) {
    %c0_i32 = arith.constant 0 : i32
    %c0_i32_0 = arith.constant 0 : i32
    %c0_i32_1 = arith.constant 0 : i32
    return %c0_i32, %c0_i32_0 : i32, i32
  }
  func.func @transform_2(%arg0: i32) -> (i32, i32) {
    %c0_i32 = arith.constant 0 : i32
    %c0_i32_0 = arith.constant 0 : i32
    %c0_i32_1 = arith.constant 0 : i32
    return %c0_i32, %c0_i32_0 : i32, i32
  }
  func.func @transform_3(%arg0: i32) -> (i32, i32) {
    %c0_i32 = arith.constant 0 : i32
    %c0_i32_0 = arith.constant 0 : i32
    %c0_i32_1 = arith.constant 0 : i32
    return %c0_i32, %c0_i32_0 : i32, i32
  }
  func.func @transform_4(%arg0: i32) -> (i32, i32) {
    %c0_i32 = arith.constant 0 : i32
    %c0_i32_0 = arith.constant 0 : i32
    %c0_i32_1 = arith.constant 0 : i32
    return %c0_i32, %c0_i32_0 : i32, i32
  }
  func.func @transform_5(%arg0: i32) -> (i32, i32) {
    %c0_i32 = arith.constant 0 : i32
    %c0_i32_0 = arith.constant 0 : i32
    return %c0_i32, %arg0 : i32, i32
  }
}

</mosaic_0001>

<bundles_post_ra>
// kernel: tpu_custom_call.1
= control target key start
LH: loop header
LB: loop body
LE: loop exit
PB: predicated region body
PF: predicated region fallthrough
CT: control target
= control target key end

     0   :  { %v3623_v2 = vmov 1   ;;  %v3625_v3 = vmov 0   ;;  %s3617_s0 = inlined_call_operand.vmem [shape: f32[2,128], index: 0, kind: input, shape index: {}]   ;;  %s3618_s1 = inlined_call_operand.vmem [shape: f32[512,2], index: 1, kind: input, shape index: {}]   ;;  %s3619_s2 = inlined_call_operand.vmem [shape: f32[512,1], index: 2, kind: input, shape index: {}]   ;;  %s3620_s3 = inlined_call_operand.vmem [shape: f32[512,1], index: 3, kind: input, shape index: {}]   ;;  %s3621_s4 = inlined_call_operand.<no memory space> [shape: f32[1,1], index: 4, kind: input, shape index: {}]   ;;  %s3622_s5 = inlined_call_operand.hbm [shape: f32[1,128], index: 5, kind: output, shape index: {}]  }
   0x1   :  { %v26_v0 = vld [vmem:[%s3618_s1 + $0x10] sm:$0xff]  ;;  %v2079_v1 = vld [vmem:[%s3618_s1] sm:$0xff]  ;;  %2002 = vset.pattern.permute.xlu0 %v3623_v2  ;;  %2001 = vset.pattern.permute.xlu1 %v3625_v3  ;;  %v27_v4 = vld [vmem:[%s3618_s1 + $0x18] sm:$0xff] }
   0x2   :  { %68 = vperm.xlu1 %2001, %v26_v0   ;;  %157 = vperm.xlu0 %2002, %v2079_v1   ;;  %v29_v5 = vld [vmem:[%s3618_s1 + $0x28] sm:$0xff]  ;;  %v31_v6 = vld [vmem:[%s3618_s1 + $0x38] sm:$0xff] }
   0x3   :  { %v33_v7 = vld [vmem:[%s3618_s1 + $0x48] sm:$0xff]  ;;  %v35_v8 = vld [vmem:[%s3618_s1 + $0x58] sm:$0xff] }
   0x6   :  { %73 = vperm.xlu1 %2001, %v27_v4   ;;  %169 = vperm.xlu0 %2002, %v27_v4  }
   0xa   :  { %83 = vperm.xlu1 %2001, %v29_v5   ;;  %177 = vperm.xlu0 %2002, %v29_v5  }
   0xe   :  { %93 = vperm.xlu1 %2001, %v31_v6   ;;  %185 = vperm.xlu0 %2002, %v31_v6  }
  0x12   :  { %103 = vperm.xlu1 %2001, %v33_v7   ;;  %193 = vperm.xlu0 %2002, %v33_v7  }
  0x13   :  { %11 = vsyncpa [#allocation4], 0  ;;  %v37_v9 = vld [vmem:[%s3618_s1 + $0x68] sm:$0xff]  ;;  %v39_v10 = vld [vmem:[%s3618_s1 + $0x78] sm:$0xff]  ;;  %s2042_s10 = smov [#allocation3]  }
  0x14   :  { %v2108_v11 = vld [vmem:[%s3618_s1 + $0x80] sm:$0xff]  ;;  %v2113_v12 = vld [vmem:[%s3618_s1 + $0x8] sm:$0xff]  ;;  %v2121_v13 = vld [vmem:[%s3618_s1 + $0x98] sm:$0xff]  ;;  %s1988_s11 = sshll.u32 %s2042_s10, 4  ;;  %s1989_s11 = int_to_ptr.vmem [resolvable:$true] %s1988_s11 }
  0x15   :  { %v2127_v14 = vld [vmem:[%s3618_s1 + $0xa8] sm:$0xff]  ;;  %v2132_v15 = vld [vmem:[%s3618_s1 + $0x20] sm:$0xff]  ;;  %v2139_v16 = vld [vmem:[%s3618_s1 + $0xb8] sm:$0xff]  ;;  %s2016_s12 = scalar_lea.vmem %s1989_s11, 16  ;;  %s2020_s13 = scalar_lea.vmem %s1989_s11, 32 }
  0x16   :  { %113 = vperm.xlu1 %2001, %v35_v8   ;;  %201 = vperm.xlu0 %2002, %v35_v8   ;;  %v2144_v17 = vld [vmem:[%s3618_s1 + $0x30] sm:$0xff]  ;;  %v2151_v18 = vld [vmem:[%s3618_s1 + $0xc8] sm:$0xff]  ;;  %v2156_v19 = vld [vmem:[%s3618_s1 + $0x40] sm:$0xff]  ;;  %p2017_p0 = scmp.ne.s32.totalorder %s1989_s11, %s2016_s12  ;;  %p2021_p1 = scmp.lt.s32.totalorder %s1989_s11, %s1989_s11 }
  0x17   :  { %v2163_v20 = vld [vmem:[%s3618_s1 + $0xd8] sm:$0xff]  ;;  %v2168_v21 = vld [vmem:[%s3618_s1 + $0x50] sm:$0xff]  ;;  %v2175_v22 = vld [vmem:[%s3618_s1 + $0xe8] sm:$0xff]  ;;  %p2022_p2 = scmp.lt.s32.totalorder %s2020_s13, %s2016_s12 }
  0x18   :  { %v2180_v23 = vld [vmem:[%s3618_s1 + $0x60] sm:$0xff]  ;;  %v2187_v24 = vld [vmem:[%s3618_s1 + $0xf8] sm:$0xff]  ;;  %v2192_v25 = vld [vmem:[%s3618_s1 + $0x70] sm:$0xff] }
  0x19   :  { %v2199_v26 = vld [vmem:[%s3618_s1 + $0x100] sm:$0xff]  ;;  %v2209_v28 = vld [vmem:[%s3618_s1 + $0x118] sm:$0xff]  ;;  %v42_v29 = vld [vmem:[%s3619_s2 + $0x10] sm:$0xff]  ;;  %p2023_p3 = por %p2022_p2, %p2021_p1 }
  0x1a   :  { %123 = vperm.xlu1 %2001, %v37_v9   ;;  %209 = vperm.xlu0 %2002, %v37_v9   ;;  %v40_v27 = vld [vmem:[%s3619_s2] sm:$0xff]  ;;  %v2218_v30 = vld [vmem:[%s3618_s1 + $0x128] sm:$0xff]  ;;  %v43_v31 = vld [vmem:[%s3619_s2 + $0x18] sm:$0xff] }
  0x1b   :  { %v2227_v32 = vld [vmem:[%s3618_s1 + $0x138] sm:$0xff]  ;;  %v45_v33 = vld [vmem:[%s3619_s2 + $0x28] sm:$0xff]  ;;  %v2272_v42 = vld [vmem:[%s3618_s1 + $0x180] sm:$0xff]  ;;  %p2024_p4 = pnand %p2023_p3, %p2017_p0 }
  0x1c   :  { %v2236_v34 = vld [vmem:[%s3618_s1 + $0x148] sm:$0xff]  ;;  %v47_v35 = vld [vmem:[%s3619_s2 + $0x38] sm:$0xff] }
  0x1d   :  { %v2245_v36 = vld [vmem:[%s3618_s1 + $0x158] sm:$0xff]  ;;  %v49_v37 = vld [vmem:[%s3619_s2 + $0x48] sm:$0xff] }
  0x1e   :  { %133 = vperm.xlu1 %2001, %v39_v10   ;;  %217 = vperm.xlu0 %2002, %v39_v10   ;;  %v2254_v38 = vld [vmem:[%s3618_s1 + $0x168] sm:$0xff]  ;;  %v51_v39 = vld [vmem:[%s3619_s2 + $0x58] sm:$0xff] }
  0x1f   :  { %v2263_v40 = vld [vmem:[%s3618_s1 + $0x178] sm:$0xff]  ;;  %v53_v41 = vld [vmem:[%s3619_s2 + $0x68] sm:$0xff] }
  0x20   :  { %v55_v43 = vld [vmem:[%s3619_s2 + $0x78] sm:$0xff]  ;;  %v385_v45 = vld [vmem:[%s3620_s3 + $0x8] sm:$0xff] }
  0x21   :  { %v2281_v44 = vld [vmem:[%s3618_s1 + $0x198] sm:$0xff]  ;;  %v2290_v46 = vld [vmem:[%s3618_s1 + $0x1a8] sm:$0xff] }
  0x22   :  { %2003 = vset.pattern.permute.xlu1 %v3623_v2  ;;  %647 = vperm.xlu0 %2002, %v2108_v11   ;;  %v387_v47 = vld [vmem:[%s3620_s3 + $0x18] sm:$0xff]  ;;  %v389_v49 = vld [vmem:[%s3620_s3 + $0x28] sm:$0xff] }
  0x23   :  { %161 = vperm.xlu1 %2003, %v2113_v12   ;;  %v2299_v48 = vld [vmem:[%s3618_s1 + $0x1b8] sm:$0xff]  ;;  %v2308_v50 = vld [vmem:[%s3618_s1 + $0x1c8] sm:$0xff] }
  0x24   :  { %v391_v51 = vld [vmem:[%s3620_s3 + $0x38] sm:$0xff]  ;;  %v393_v53 = vld [vmem:[%s3620_s3 + $0x48] sm:$0xff] }
  0x25   :  { %v2317_v52 = vld [vmem:[%s3618_s1 + $0x1d8] sm:$0xff]  ;;  %v1503_v54 = vld [vmem:[%s3618_s1 + $0x1e8] sm:$0xff] }
  0x26   :  { %659 = vperm.xlu0 %2002, %v2121_v13   ;;  %v395_v55 = vld [vmem:[%s3620_s3 + $0x58] sm:$0xff]  ;;  %v397_v57 = vld [vmem:[%s3620_s3 + $0x68] sm:$0xff] }
  0x27   :  { %165 = vperm.xlu1 %2003, %v26_v0   ;;  %v1505_v56 = vld [vmem:[%s3618_s1 + $0x1f8] sm:$0xff]  ;;  %v519_v63 = vld [vmem:[%s3618_s1 + $0x88] sm:$0xff] }
  0x28   :  { %v399_v60 = vld [vmem:[%s3620_s3 + $0x78] sm:$0xff] }
  0x2a   :  { %667 = vperm.xlu0 %2002, %v2127_v14  }
  0x2b   :  { %173 = vperm.xlu1 %2003, %v2132_v15  }
  0x2e   :  { %675 = vperm.xlu0 %2002, %v2139_v16  }
  0x2f   :  { %181 = vperm.xlu1 %2003, %v2144_v17  }
  0x32   :  { %683 = vperm.xlu0 %2002, %v2151_v18  }
  0x33   :  { %189 = vperm.xlu1 %2003, %v2156_v19  }
  0x36   :  { %691 = vperm.xlu0 %2002, %v2163_v20  }
  0x37   :  { %197 = vperm.xlu1 %2003, %v2168_v21  }
  0x3a   :  { %699 = vperm.xlu0 %2002, %v2175_v22  }
  0x3b   :  { %205 = vperm.xlu1 %2003, %v2180_v23  }
  0x3e   :  { %707 = vperm.xlu0 %2002, %v2187_v24  }
  0x3f   :  { %213 = vperm.xlu1 %2003, %v2192_v25  }
  0x42   :  { %1133 = vperm.xlu0 %2002, %v2199_v26  }
  0x43   :  { %2004 = vset.pattern.permute.xlu1 %v3625_v3 }
  0x44   :  { %258 = vperm.xlu1 %2004, %v40_v27  }
  0x46   :  { %1145 = vperm.xlu0 %2002, %v2209_v28  }
  0x48   :  { %268 = vperm.xlu1 %2004, %v42_v29  }
  0x4a   :  { %1153 = vperm.xlu0 %2002, %v2218_v30  }
  0x4c   :  { %273 = vperm.xlu1 %2004, %v43_v31   ;;  %v2427_v31 = vld [vmem:[%s3618_s1 + $0xa0] sm:$0xff] }
  0x4e   :  { %1161 = vperm.xlu0 %2002, %v2227_v32  }
  0x50   :  { %283 = vperm.xlu1 %2004, %v45_v33   ;;  %v50_v33 = vld [vmem:[%s3619_s2 + $0x50] sm:$0xff] }
  0x52   :  { %1169 = vperm.xlu0 %2002, %v2236_v34  }
  0x54   :  { %293 = vperm.xlu1 %2004, %v47_v35  }
  0x56   :  { %1177 = vperm.xlu0 %2002, %v2245_v36  }
  0x58   :  { %303 = vperm.xlu1 %2004, %v49_v37  }
  0x5a   :  { %1185 = vperm.xlu0 %2002, %v2254_v38  }
  0x5c   :  { %313 = vperm.xlu1 %2004, %v51_v39   ;;  %v2440_v39 = vld [vmem:[%s3618_s1 + $0xb0] sm:$0xff] }
  0x5e   :  { %1193 = vperm.xlu0 %2002, %v2263_v40  }
  0x60   :  { %323 = vperm.xlu1 %2004, %v53_v41   ;;  %v52_v41 = vld [vmem:[%s3619_s2 + $0x60] sm:$0xff] }
  0x62   :  { %1619 = vperm.xlu0 %2002, %v2272_v42  }
  0x64   :  { %333 = vperm.xlu1 %2004, %v55_v43  }
  0x66   :  { %1631 = vperm.xlu0 %2002, %v2281_v44  }
  0x68   :  { %407 = vperm.xlu1 %2004, %v385_v45  }
  0x6a   :  { %1639 = vperm.xlu0 %2002, %v2290_v46  }
  0x6c   :  { %417 = vperm.xlu1 %2004, %v387_v47   ;;  %v2453_v47 = vld [vmem:[%s3618_s1 + $0xc0] sm:$0xff] }
  0x6e   :  { %1647 = vperm.xlu0 %2002, %v2299_v48  }
  0x70   :  { %427 = vperm.xlu1 %2004, %v389_v49   ;;  %v54_v49 = vld [vmem:[%s3619_s2 + $0x70] sm:$0xff] }
  0x72   :  { %1655 = vperm.xlu0 %2002, %v2308_v50  }
  0x74   :  { %437 = vperm.xlu1 %2004, %v391_v51  }
  0x76   :  { %1663 = vperm.xlu0 %2002, %v2317_v52  }
  0x78   :  { %447 = vperm.xlu1 %2004, %v393_v53  }
  0x7a   :  { %1671 = vperm.xlu0 %2002, %v1503_v54   ;;  %v2466_v54 = vld [vmem:[%s3618_s1 + $0xd0] sm:$0xff] }
  0x7c   :  { %457 = vperm.xlu1 %2004, %v395_v55   ;;  %v384_v55 = vld [vmem:[%s3620_s3] sm:$0xff] }
  0x7e   :  { %1679 = vperm.xlu0 %2002, %v1505_v56  }
  0x80   :  { %467 = vperm.xlu1 %2004, %v397_v57  }
  0x81   :  { %v2335_v58 = vpop.permute.xlu1 %68  ;;  %v2337_v59 = vpop.permute.xlu0 %157 }
  0x82   :  { %3627 = vst [vmem:[#allocation6_spill] sm:$0xff] %v2335_v58  ;;  %3628 = vst [vmem:[#allocation7_spill] sm:$0xff] %v2337_v59  ;;  %2010 = vset.pattern.permute.xlu0 %v3625_v3 }
  0x83   :  { %58 = vperm.xlu0 %2010, %v2079_v1  }
  0x84   :  { %477 = vperm.xlu1 %2004, %v399_v60   ;;  %v2479_v60 = vld [vmem:[%s3618_s1 + $0xe0] sm:$0xff] }
  0x85   :  { %v2344_v61 = vpop.permute.xlu1 %73  ;;  %v2346_v62 = vpop.permute.xlu0 %169 }
  0x86   :  { %3629 = vst [vmem:[#allocation8_spill] sm:$0xff] %v2344_v61  ;;  %3630 = vst [vmem:[#allocation9_spill] sm:$0xff] %v2346_v62  ;;  %v1362_v61 = vld [vmem:[%s3620_s3 + $0x130] sm:$0xff] }
  0x87   :  { %63 = vperm.xlu0 %2010, %v2113_v12  }
  0x88   :  { %557 = vperm.xlu1 %2004, %v519_v63  }
  0x89   :  { %v2352_v0 = vpop.permute.xlu1 %83  ;;  %v2354_v4 = vpop.permute.xlu0 %177 }
  0x8a   :  { %3631 = vst [vmem:[#allocation10_spill] sm:$0xff] %v2352_v0  ;;  %3632 = vst [vmem:[#allocation11_spill] sm:$0xff] %v2354_v4  ;;  %v1356_v0 = vld [vmem:[%s3620_s3 + $0x100] sm:$0xff] }
  0x8b   :  { %78 = vperm.xlu0 %2010, %v2132_v15   ;;  %v41_v15 = vld [vmem:[%s3619_s2 + $0x8] sm:$0xff] }
  0x8c   :  { %567 = vperm.xlu1 %2004, %v2121_v13  }
  0x8d   :  { %v2358_v1 = vpop.permute.xlu1 %93  ;;  %v2360_v5 = vpop.permute.xlu0 %185 }
  0x8e   :  { %3633 = vst [vmem:[#allocation12_spill] sm:$0xff] %v2358_v1  ;;  %3634 = vst [vmem:[#allocation13_spill] sm:$0xff] %v2360_v5 }
  0x8f   :  { %88 = vperm.xlu0 %2010, %v2144_v17  }
  0x90   :  { %577 = vperm.xlu1 %2004, %v2127_v14  }
  0x91   :  { %v2364_v6 = vpop.permute.xlu1 %103  ;;  %v2366_v7 = vpop.permute.xlu0 %193 }
  0x92   :  { %3635 = vst [vmem:[#allocation14_spill] sm:$0xff] %v2364_v6  ;;  %3636 = vst [vmem:[#allocation15_spill] sm:$0xff] %v2366_v7  ;;  %v1016_v7 = vld [vmem:[%s3618_s1 + $0x160] sm:$0xff] }
  0x93   :  { %98 = vperm.xlu0 %2010, %v2156_v19  }
  0x94   :  { %587 = vperm.xlu1 %2004, %v2139_v16  }
  0x95   :  { %v2370_v8 = vpop.permute.xlu1 %113  ;;  %v2372_v9 = vpop.permute.xlu0 %201 }
  0x96   :  { %3637 = vst [vmem:[#allocation16_spill] sm:$0xff] %v2370_v8  ;;  %3638 = vst [vmem:[#allocation17_spill] sm:$0xff] %v2372_v9  ;;  %v1012_v9 = vld [vmem:[%s3618_s1 + $0x140] sm:$0xff]  ;;  %v1014_v8 = vld [vmem:[%s3618_s1 + $0x150] sm:$0xff] }
  0x97   :  { %108 = vperm.xlu0 %2010, %v2168_v21   ;;  %v46_v21 = vld [vmem:[%s3619_s2 + $0x30] sm:$0xff] }
  0x98   :  { %597 = vperm.xlu1 %2004, %v2151_v18   ;;  %v44_v18 = vld [vmem:[%s3619_s2 + $0x20] sm:$0xff] }
  0x99   :  { %v2376_v10 = vpop.permute.xlu1 %123  ;;  %v2378_v12 = vpop.permute.xlu0 %209 }
  0x9a   :  { %3639 = vst [vmem:[#allocation18_spill] sm:$0xff] %v2376_v10  ;;  %3640 = vst [vmem:[#allocation19_spill] sm:$0xff] %v2378_v12 }
  0x9b   :  { %118 = vperm.xlu0 %2010, %v2180_v23  }
  0x9c   :  { %607 = vperm.xlu1 %2004, %v2163_v20  }
  0x9d   :  { %v2382_v13 = vpop.permute.xlu1 %133  ;;  %v2384_v14 = vpop.permute.xlu0 %217 }
  0x9e   :  { %3641 = vst [vmem:[#allocation20_spill] sm:$0xff] %v2382_v13  ;;  %3642 = vst [vmem:[#allocation21_spill] sm:$0xff] %v2384_v14 }
  0x9f   :  { %128 = vperm.xlu0 %2010, %v2192_v25   ;;  %v48_v25 = vld [vmem:[%s3619_s2 + $0x40] sm:$0xff] }
  0xa0   :  { %617 = vperm.xlu1 %2004, %v2175_v22  }
  0xa1   :  { %v2391_v16 = vpop.permute.xlu0 %647 }
  0xa2   :  { %v2393_v17 = vpop.permute.xlu1 %161 }
  0xa3   :  { %3643 = vst [vmem:[#allocation22_spill] sm:$0xff] %v2393_v17  ;;  %263 = vperm.xlu0 %2010, %v41_v15  }
  0xa4   :  { %627 = vperm.xlu1 %2004, %v2187_v24   ;;  %v2414_v24 = vld [vmem:[%s3618_s1 + $0x90] sm:$0xff] }
  0xa5   :  { %v2399_v19 = vpop.permute.xlu0 %659 }
  0xa6   :  { %v2401_v20 = vpop.permute.xlu1 %165 }
  0xa7   :  { %3644 = vst [vmem:[#allocation23_spill] sm:$0xff] %v2401_v20  ;;  %278 = vperm.xlu0 %2010, %v44_v18   ;;  %v2490_v18 = vld [vmem:[%s3618_s1 + $0xf0] sm:$0xff]  ;;  %v2926_v20 = vld [vmem:[%s3617_s0] ss:$0 sm:$0xff] }
  0xa8   :  { %2005 = vset.pattern.permute.xlu1 %v3623_v2 }
  0xa9   :  { %651 = vperm.xlu1 %2005, %v519_v63   ;;  %v2407_v22 = vpop.permute.xlu0 %667  ;;  %v386_v63 = vld [vmem:[%s3620_s3 + $0x10] sm:$0xff] }
  0xaa   :  { %v2409_v23 = vpop.permute.xlu1 %173 }
  0xab   :  { %3645 = vst [vmem:[#allocation24_spill] sm:$0xff] %v2409_v23  ;;  %288 = vperm.xlu0 %2010, %v46_v21   ;;  %v1358_v23 = vld [vmem:[%s3620_s3 + $0x110] sm:$0xff] }
  0xad   :  { %655 = vperm.xlu1 %2005, %v2414_v24   ;;  %v2420_v27 = vpop.permute.xlu0 %675 }
  0xae   :  { %v2422_v29 = vpop.permute.xlu1 %181 }
  0xaf   :  { %3646 = vst [vmem:[#allocation25_spill] sm:$0xff] %v2422_v29  ;;  %298 = vperm.xlu0 %2010, %v48_v25   ;;  %v388_v25 = vld [vmem:[%s3620_s3 + $0x20] sm:$0xff] }
  0xb0   :  { %v1028_v29 = vld [vmem:[%s3619_s2 + $0x140] sm:$0xff] }
  0xb1   :  { %663 = vperm.xlu1 %2005, %v2427_v31   ;;  %v2433_v35 = vpop.permute.xlu0 %683 }
  0xb2   :  { %v2435_v37 = vpop.permute.xlu1 %189 }
  0xb3   :  { %3647 = vst [vmem:[#allocation26_spill] sm:$0xff] %v2435_v37  ;;  %308 = vperm.xlu0 %2010, %v50_v33  }
  0xb5   :  { %671 = vperm.xlu1 %2005, %v2440_v39   ;;  %v2446_v43 = vpop.permute.xlu0 %691 }
  0xb6   :  { %v2448_v45 = vpop.permute.xlu1 %197 }
  0xb7   :  { %3648 = vst [vmem:[#allocation27_spill] sm:$0xff] %v2448_v45  ;;  %318 = vperm.xlu0 %2010, %v52_v41  }
  0xb9   :  { %679 = vperm.xlu1 %2005, %v2453_v47   ;;  %v2459_v51 = vpop.permute.xlu0 %699 }
  0xba   :  { %v2461_v53 = vpop.permute.xlu1 %205 }
  0xbb   :  { %3649 = vst [vmem:[#allocation28_spill] sm:$0xff] %v2461_v53  ;;  %328 = vperm.xlu0 %2010, %v54_v49   ;;  %v534_v49 = vld [vmem:[%s3619_s2 + $0x80] sm:$0xff] }
  0xbd   :  { %687 = vperm.xlu1 %2005, %v2466_v54   ;;  %v2472_v56 = vpop.permute.xlu0 %707 }
  0xbe   :  { %3650 = vst [vmem:[#allocation29_spill] sm:$0xff] %v2472_v56  ;;  %v2474_v57 = vpop.permute.xlu1 %213 }
  0xbf   :  { %3651 = vst [vmem:[#allocation30_spill] sm:$0xff] %v2474_v57  ;;  %402 = vperm.xlu0 %2010, %v384_v55   ;;  %v390_v55 = vld [vmem:[%s3620_s3 + $0x30] sm:$0xff] }
  0xc1   :  { %695 = vperm.xlu1 %2005, %v2479_v60   ;;  %v2485_v15 = vpop.permute.xlu0 %1133 }
  0xc2   :  { %3652 = vst [vmem:[#allocation31_spill] sm:$0xff] %v2485_v15 }
  0xc3   :  { %v2492_v21 = vpop.permute.xlu1 %258  ;;  %412 = vperm.xlu0 %2010, %v386_v63  }
  0xc4   :  { %3653 = vst [vmem:[#allocation32_spill] sm:$0xff] %v2492_v21 }
  0xc5   :  { %703 = vperm.xlu1 %2005, %v2490_v18   ;;  %v2498_v33 = vpop.permute.xlu0 %1145 }
  0xc6   :  { %3654 = vst [vmem:[#allocation33_spill] sm:$0xff] %v2498_v33  ;;  %v392_v33 = vld [vmem:[%s3620_s3 + $0x40] sm:$0xff] }
  0xc7   :  { %v2500_v41 = vpop.permute.xlu1 %268  ;;  %422 = vperm.xlu0 %2010, %v388_v25   ;;  %v536_v25 = vld [vmem:[%s3619_s2 + $0x90] sm:$0xff] }
  0xc8   :  { %3655 = vst [vmem:[#allocation34_spill] sm:$0xff] %v2500_v41  ;;  %v1360_v41 = vld [vmem:[%s3620_s3 + $0x120] sm:$0xff] }
  0xc9   :  { %2006 = vset.pattern.permute.xlu1 %v3625_v3  ;;  %v2509_v63 = vpop.permute.xlu0 %1153 }
  0xca   :  { %3656 = vst [vmem:[#allocation35_spill] sm:$0xff] %v2509_v63  ;;  %744 = vperm.xlu1 %2006, %v534_v49   ;;  %v537_v49 = vld [vmem:[%s3619_s2 + $0x98] sm:$0xff] }
  0xcb   :  { %v2511_v2 = vpop.permute.xlu1 %273  ;;  %432 = vperm.xlu0 %2010, %v390_v55   ;;  %v394_v55 = vld [vmem:[%s3620_s3 + $0x50] sm:$0xff] }
  0xcc   :  { %3657 = vst [vmem:[#allocation36_spill] sm:$0xff] %v2511_v2 }
  0xcd   :  { %v2519_v15 = vpop.permute.xlu0 %1161 }
  0xce   :  { %3658 = vst [vmem:[#allocation37_spill] sm:$0xff] %v2519_v15  ;;  %754 = vperm.xlu1 %2006, %v536_v25   ;;  %v539_v25 = vld [vmem:[%s3619_s2 + $0xa8] sm:$0xff] }
  0xcf   :  { %v2521_v57 = vpop.permute.xlu1 %283  ;;  %442 = vperm.xlu0 %2010, %v392_v33   ;;  %v396_v33 = vld [vmem:[%s3620_s3 + $0x60] sm:$0xff] }
  0xd0   :  { %3659 = vst [vmem:[#allocation38_spill] sm:$0xff] %v2521_v57 }
  0xd1   :  { %v2529_v3 = vpop.permute.xlu0 %1169 }
  0xd2   :  { %3660 = vst [vmem:[#allocation39_spill] sm:$0xff] %v2529_v3  ;;  %759 = vperm.xlu1 %2006, %v537_v49   ;;  %v541_v49 = vld [vmem:[%s3619_s2 + $0xb8] sm:$0xff] }
  0xd3   :  { %v2531_v63 = vpop.permute.xlu1 %293  ;;  %452 = vperm.xlu0 %2010, %v394_v55   ;;  %v398_v55 = vld [vmem:[%s3620_s3 + $0x70] sm:$0xff] }
  0xd4   :  { %3661 = vst [vmem:[#allocation40_spill] sm:$0xff] %v2531_v63 }
  0xd5   :  { %v2539_v15 = vpop.permute.xlu0 %1177 }
  0xd6   :  { %3662 = vst [vmem:[#allocation41_spill] sm:$0xff] %v2539_v15  ;;  %769 = vperm.xlu1 %2006, %v539_v25   ;;  %v543_v25 = vld [vmem:[%s3619_s2 + $0xc8] sm:$0xff] }
  0xd7   :  { %v2541_v56 = vpop.permute.xlu1 %303  ;;  %462 = vperm.xlu0 %2010, %v396_v33  }
  0xd8   :  { %3663 = vst [vmem:[#allocation42_spill] sm:$0xff] %v2541_v56  ;;  %v545_v56 = vld [vmem:[%s3619_s2 + $0xd8] sm:$0xff] }
  0xd9   :  { %v2549_v3 = vpop.permute.xlu0 %1185 }
  0xda   :  { %3664 = vst [vmem:[#allocation43_spill] sm:$0xff] %v2549_v3  ;;  %779 = vperm.xlu1 %2006, %v541_v49  }
  0xdb   :  { %v2551_v53 = vpop.permute.xlu1 %313  ;;  %472 = vperm.xlu0 %2010, %v398_v55   ;;  %v547_v55 = vld [vmem:[%s3619_s2 + $0xe8] sm:$0xff] }
  0xdc   :  { %3665 = vst [vmem:[#allocation44_spill] sm:$0xff] %v2551_v53  ;;  %v548_v53 = vld [vmem:[%s3619_s2 + $0xf0] sm:$0xff] }
  0xdd   :  { %v2556_v15 = vpop.permute.xlu0 %1193 }
  0xde   :  { %3666 = vst [vmem:[#allocation45_spill] sm:$0xff] %v2556_v15  ;;  %789 = vperm.xlu1 %2006, %v543_v25  }
  0xdf   :  { %v2558_v33 = vpop.permute.xlu1 %323  ;;  %552 = vperm.xlu0 %2010, %v2108_v11   ;;  %v549_v11 = vld [vmem:[%s3619_s2 + $0xf8] sm:$0xff] }
  0xe0   :  { %3667 = vst [vmem:[#allocation46_spill] sm:$0xff] %v2558_v33 }
  0xe1   :  { %v2564_v3 = vpop.permute.xlu0 %1619 }
  0xe2   :  { %3668 = vst [vmem:[#allocation47_spill] sm:$0xff] %v2564_v3  ;;  %799 = vperm.xlu1 %2006, %v545_v56  }
  0xe3   :  { %v2566_v49 = vpop.permute.xlu1 %333  ;;  %562 = vperm.xlu0 %2010, %v2414_v24   ;;  %v871_v24 = vld [vmem:[%s3620_s3 + $0x88] sm:$0xff] }
  0xe4   :  { %3669 = vst [vmem:[#allocation48_spill] sm:$0xff] %v2566_v49 }
  0xe5   :  { %v2572_v25 = vpop.permute.xlu0 %1631 }
  0xe6   :  { %3670 = vst [vmem:[#allocation49_spill] sm:$0xff] %v2572_v25  ;;  %809 = vperm.xlu1 %2006, %v547_v55  }
  0xe7   :  { %v2574_v15 = vpop.permute.xlu1 %407  ;;  %572 = vperm.xlu0 %2010, %v2427_v31   ;;  %v873_v31 = vld [vmem:[%s3620_s3 + $0x98] sm:$0xff] }
  0xe8   :  { %3671 = vst [vmem:[#allocation50_spill] sm:$0xff] %v2574_v15  ;;  %v1030_v15 = vld [vmem:[%s3619_s2 + $0x150] sm:$0xff] }
  0xe9   :  { %v2580_v56 = vpop.permute.xlu0 %1639 }
  0xea   :  { %3672 = vst [vmem:[#allocation51_spill] sm:$0xff] %v2580_v56  ;;  %819 = vperm.xlu1 %2006, %v549_v11  }
  0xeb   :  { %v2582_v3 = vpop.permute.xlu1 %417  ;;  %582 = vperm.xlu0 %2010, %v2440_v39   ;;  %v875_v39 = vld [vmem:[%s3620_s3 + $0xa8] sm:$0xff] }
  0xec   :  { %3673 = vst [vmem:[#allocation52_spill] sm:$0xff] %v2582_v3  ;;  %v1020_v3 = vld [vmem:[%s3619_s2 + $0x100] sm:$0xff] }
  0xed   :  { %v2588_v55 = vpop.permute.xlu0 %1647 }
  0xee   :  { %3674 = vst [vmem:[#allocation53_spill] sm:$0xff] %v2588_v55  ;;  %893 = vperm.xlu1 %2006, %v871_v24  }
  0xef   :  { %v2590_v25 = vpop.permute.xlu1 %427  ;;  %592 = vperm.xlu0 %2010, %v2453_v47   ;;  %v877_v47 = vld [vmem:[%s3620_s3 + $0xb8] sm:$0xff] }
  0xf0   :  { %3675 = vst [vmem:[#allocation54_spill] sm:$0xff] %v2590_v25 }
  0xf1   :  { %v2596_v11 = vpop.permute.xlu0 %1655 }
  0xf2   :  { %3676 = vst [vmem:[#allocation55_spill] sm:$0xff] %v2596_v11  ;;  %903 = vperm.xlu1 %2006, %v873_v31  }
  0xf3   :  { %v2598_v56 = vpop.permute.xlu1 %437  ;;  %602 = vperm.xlu0 %2010, %v2466_v54   ;;  %v879_v54 = vld [vmem:[%s3620_s3 + $0xc8] sm:$0xff] }
  0xf4   :  { %3677 = vst [vmem:[#allocation56_spill] sm:$0xff] %v2598_v56 }
  0xf5   :  { %v2604_v24 = vpop.permute.xlu0 %1663 }
  0xf6   :  { %3678 = vst [vmem:[#allocation57_spill] sm:$0xff] %v2604_v24  ;;  %913 = vperm.xlu1 %2006, %v875_v39   ;;  %v535_v39 = vld [vmem:[%s3619_s2 + $0x88] sm:$0xff] }
  0xf7   :  { %v2606_v55 = vpop.permute.xlu1 %447  ;;  %612 = vperm.xlu0 %2010, %v2479_v60  }
  0xf8   :  { %3679 = vst [vmem:[#allocation58_spill] sm:$0xff] %v2606_v55 }
  0xf9   :  { %v2612_v31 = vpop.permute.xlu0 %1671 }
  0xfa   :  { %3680 = vst [vmem:[#allocation59_spill] sm:$0xff] %v2612_v31  ;;  %923 = vperm.xlu1 %2006, %v877_v47   ;;  %v881_v47 = vld [vmem:[%s3620_s3 + $0xd8] sm:$0xff] }
  0xfb   :  { %v2614_v11 = vpop.permute.xlu1 %457  ;;  %622 = vperm.xlu0 %2010, %v2490_v18   ;;  %v538_v18 = vld [vmem:[%s3619_s2 + $0xa0] sm:$0xff] }
  0xfc   :  { %3681 = vst [vmem:[#allocation60_spill] sm:$0xff] %v2614_v11 }
  0xfd   :  { %v2623_v60 = vpop.permute.xlu0 %1679 }
  0xfe   :  { %3682 = vst [vmem:[#allocation61_spill] sm:$0xff] %v2623_v60  ;;  %933 = vperm.xlu1 %2006, %v879_v54   ;;  %v883_v54 = vld [vmem:[%s3620_s3 + $0xe8] sm:$0xff] }
  0xff   :  { %v2625_v24 = vpop.permute.xlu1 %467  ;;  %749 = vperm.xlu0 %2010, %v535_v39   ;;  %v540_v39 = vld [vmem:[%s3619_s2 + $0xb0] sm:$0xff] }
 0x100   :  { %3683 = vst [vmem:[#allocation62_spill] sm:$0xff] %v2625_v24 }
 0x102   :  { %943 = vperm.xlu1 %2006, %v881_v47   ;;  %v2633_v31 = vpop.permute.xlu0 %58  ;;  %v885_v47 = vld [vmem:[%s3620_s3 + $0xf8] sm:$0xff] }
 0x103   :  { %3684 = vst [vmem:[#allocation63_spill] sm:$0xff] %v2633_v31  ;;  %v2635_v49 = vpop.permute.xlu1 %477  ;;  %764 = vperm.xlu0 %2010, %v538_v18   ;;  %v542_v18 = vld [vmem:[%s3619_s2 + $0xc0] sm:$0xff] }
 0x104   :  { %3685 = vst [vmem:[#allocation64_spill] sm:$0xff] %v2635_v49 }
 0x106   :  { %953 = vperm.xlu1 %2006, %v883_v54   ;;  %v2643_v60 = vpop.permute.xlu0 %63  ;;  %v1005_v54 = vld [vmem:[%s3618_s1 + $0x108] sm:$0xff] }
 0x107   :  { %3686 = vst [vmem:[#allocation65_spill] sm:$0xff] %v2643_v60  ;;  %v2645_v24 = vpop.permute.xlu1 %557  ;;  %774 = vperm.xlu0 %2010, %v540_v39   ;;  %v544_v39 = vld [vmem:[%s3619_s2 + $0xd0] sm:$0xff]  ;;  %v1369_v60 = vld [vmem:[%s3620_s3 + $0x168] sm:$0xff] }
 0x10a   :  { %963 = vperm.xlu1 %2006, %v885_v47   ;;  %v2653_v49 = vpop.permute.xlu0 %78  ;;  %v546_v47 = vld [vmem:[%s3619_s2 + $0xe0] sm:$0xff] }
 0x10b   :  { %3687 = vst [vmem:[#allocation66_spill] sm:$0xff] %v2653_v49  ;;  %v2655_v11 = vpop.permute.xlu1 %567  ;;  %784 = vperm.xlu0 %2010, %v542_v18  }
 0x10e   :  { %1043 = vperm.xlu1 %2006, %v1005_v54   ;;  %v2663_v33 = vpop.permute.xlu0 %88 }
 0x10f   :  { %3688 = vst [vmem:[#allocation67_spill] sm:$0xff] %v2663_v33  ;;  %v2665_v55 = vpop.permute.xlu1 %577  ;;  %794 = vperm.xlu0 %2010, %v544_v39  }
 0x112   :  { %1053 = vperm.xlu1 %2006, %v2209_v28   ;;  %v2671_v18 = vpop.permute.xlu0 %98  ;;  %v870_v28 = vld [vmem:[%s3620_s3 + $0x80] sm:$0xff] }
 0x113   :  { %3689 = vst [vmem:[#allocation68_spill] sm:$0xff] %v2671_v18  ;;  %v2673_v56 = vpop.permute.xlu1 %587  ;;  %804 = vperm.xlu0 %2010, %v546_v47  }
 0x116   :  { %1063 = vperm.xlu1 %2006, %v2218_v30   ;;  %v2679_v45 = vpop.permute.xlu0 %108  ;;  %v872_v30 = vld [vmem:[%s3620_s3 + $0x90] sm:$0xff] }
 0x117   :  { %3690 = vst [vmem:[#allocation69_spill] sm:$0xff] %v2679_v45  ;;  %v2681_v39 = vpop.permute.xlu1 %597  ;;  %814 = vperm.xlu0 %2010, %v548_v53  }
 0x11a   :  { %1073 = vperm.xlu1 %2006, %v2227_v32   ;;  %v2687_v25 = vpop.permute.xlu0 %118  ;;  %v874_v32 = vld [vmem:[%s3620_s3 + $0xa0] sm:$0xff] }
 0x11b   :  { %3691 = vst [vmem:[#allocation70_spill] sm:$0xff] %v2687_v25  ;;  %v2689_v47 = vpop.permute.xlu1 %607  ;;  %888 = vperm.xlu0 %2010, %v870_v28  }
 0x11e   :  { %1083 = vperm.xlu1 %2006, %v2236_v34   ;;  %v2695_v45 = vpop.permute.xlu0 %128  ;;  %v876_v34 = vld [vmem:[%s3620_s3 + $0xb0] sm:$0xff] }
 0x11f   :  { %3692 = vst [vmem:[#allocation71_spill] sm:$0xff] %v2695_v45  ;;  %v2697_v53 = vpop.permute.xlu1 %617  ;;  %898 = vperm.xlu0 %2010, %v872_v30  }
 0x122   :  { %1093 = vperm.xlu1 %2006, %v2245_v36   ;;  %v2703_v25 = vpop.permute.xlu0 %263  ;;  %v878_v36 = vld [vmem:[%s3620_s3 + $0xc0] sm:$0xff] }
 0x123   :  { %3693 = vst [vmem:[#allocation72_spill] sm:$0xff] %v2703_v25  ;;  %v2705_v28 = vpop.permute.xlu1 %627  ;;  %908 = vperm.xlu0 %2010, %v874_v32   ;;  %v1364_v25 = vld [vmem:[%s3620_s3 + $0x140] sm:$0xff] }
 0x124   :  { %3694 = vst [vmem:[#allocation73_spill] sm:$0xff] %v2705_v28  ;;  %v3697_v28 = vmov 1  }
 0x126   :  { %1103 = vperm.xlu1 %2006, %v2254_v38   ;;  %v2711_v45 = vpop.permute.xlu0 %278  ;;  %v880_v38 = vld [vmem:[%s3620_s3 + $0xd0] sm:$0xff] }
 0x127   :  { %3695 = vst [vmem:[#allocation74_spill] sm:$0xff] %v2711_v45  ;;  %918 = vperm.xlu0 %2010, %v876_v34  }
 0x128   :  { %v2713_v30 = vpop.permute.xlu1 %651 }
 0x12a   :  { %1113 = vperm.xlu1 %2006, %v2263_v40   ;;  %v2719_v63 = vpop.permute.xlu0 %288  ;;  %v1006_v40 = vld [vmem:[%s3618_s1 + $0x110] sm:$0xff] }
 0x12b   :  { %3696 = vst [vmem:[#allocation75_spill] sm:$0xff] %v2719_v63  ;;  %928 = vperm.xlu0 %2010, %v878_v36   ;;  %v882_v36 = vld [vmem:[%s3620_s3 + $0xe0] sm:$0xff] }
 0x12c   :  { %v2721_v32 = vpop.permute.xlu1 %655 }
 0x12e   :  { %2007 = vset.pattern.permute.xlu1 %v3697_v28  ;;  %v2727_v34 = vpop.permute.xlu0 %298 }
 0x12f   :  { %3698 = vst [vmem:[#allocation76_spill] sm:$0xff] %v2727_v34  ;;  %1137 = vperm.xlu1 %2007, %v1005_v54   ;;  %938 = vperm.xlu0 %2010, %v880_v38   ;;  %v1008_v54 = vld [vmem:[%s3618_s1 + $0x120] sm:$0xff]  ;;  %v884_v38 = vld [vmem:[%s3620_s3 + $0xf0] sm:$0xff] }
 0x130   :  { %v2729_v14 = vpop.permute.xlu1 %663 }
 0x132   :  { %v2737_v13 = vpop.permute.xlu0 %308 }
 0x133   :  { %3699 = vst [vmem:[#allocation77_spill] sm:$0xff] %v2737_v13  ;;  %1141 = vperm.xlu1 %2007, %v1006_v40   ;;  %948 = vperm.xlu0 %2010, %v882_v36   ;;  %v1010_v36 = vld [vmem:[%s3618_s1 + $0x130] sm:$0xff] }
 0x134   :  { %v2739_v12 = vpop.permute.xlu1 %671 }
 0x136   :  { %v2747_v34 = vpop.permute.xlu0 %318 }
 0x137   :  { %3700 = vst [vmem:[#allocation78_spill] sm:$0xff] %v2747_v34  ;;  %1149 = vperm.xlu1 %2007, %v1008_v54   ;;  %958 = vperm.xlu0 %2010, %v884_v38  }
 0x138   :  { %v2749_v37 = vpop.permute.xlu1 %679 }
 0x13a   :  { %v2754_v13 = vpop.permute.xlu0 %328 }
 0x13b   :  { %3701 = vst [vmem:[#allocation79_spill] sm:$0xff] %v2754_v13  ;;  %1157 = vperm.xlu1 %2007, %v1010_v36   ;;  %1038 = vperm.xlu0 %2010, %v2199_v26  }
 0x13c   :  { %v2757_v10 = vpop.permute.xlu1 %687 }
 0x13e   :  { %v2762_v34 = vpop.permute.xlu0 %402 }
 0x13f   :  { %3702 = vst [vmem:[#allocation80_spill] sm:$0xff] %v2762_v34  ;;  %1165 = vperm.xlu1 %2007, %v1012_v9   ;;  %1048 = vperm.xlu0 %2010, %v1006_v40   ;;  %v1018_v40 = vld [vmem:[%s3618_s1 + $0x170] sm:$0xff]  ;;  %v1032_v34 = vld [vmem:[%s3619_s2 + $0x160] sm:$0xff] }
 0x140   :  { %v2764_v38 = vpop.permute.xlu1 %695 }
 0x142   :  { %v2769_v13 = vpop.permute.xlu0 %412 }
 0x143   :  { %3703 = vst [vmem:[#allocation81_spill] sm:$0xff] %v2769_v13  ;;  %1173 = vperm.xlu1 %2007, %v1014_v8   ;;  %1058 = vperm.xlu0 %2010, %v1008_v54  }
 0x144   :  { %v2771_v26 = vpop.permute.xlu1 %703 }
 0x146   :  { %v2776_v6 = vpop.permute.xlu0 %422 }
 0x147   :  { %3704 = vst [vmem:[#allocation82_spill] sm:$0xff] %v2776_v6  ;;  %1181 = vperm.xlu1 %2007, %v1016_v7   ;;  %1068 = vperm.xlu0 %2010, %v1010_v36   ;;  %v3707_v6 = vmov 0  }
 0x149   :  { %v2781_v18 = vpop.permute.xlu1 %744 }
 0x14a   :  { %v2783_v63 = vpop.permute.xlu0 %432 }
 0x14b   :  { %3705 = vst [vmem:[#allocation83_spill] sm:$0xff] %v2783_v63  ;;  %1189 = vperm.xlu1 %2007, %v1018_v40   ;;  %1078 = vperm.xlu0 %2010, %v1012_v9   ;;  %v1022_v63 = vld [vmem:[%s3619_s2 + $0x110] sm:$0xff] }
 0x14d   :  { %v2785_v54 = vpop.permute.xlu1 %754 }
 0x14e   :  { %v2790_v57 = vpop.permute.xlu0 %442 }
 0x14f   :  { %3706 = vst [vmem:[#allocation84_spill] sm:$0xff] %v2790_v57  ;;  %2008 = vset.pattern.permute.xlu1 %v3707_v6  ;;  %1088 = vperm.xlu0 %2010, %v1014_v8   ;;  %v1023_v57 = vld [vmem:[%s3619_s2 + $0x118] sm:$0xff] }
 0x150   :  { %1230 = vperm.xlu1 %2008, %v1020_v3   ;;  %v1021_v3 = vld [vmem:[%s3619_s2 + $0x108] sm:$0xff] }
 0x151   :  { %v2793_v36 = vpop.permute.xlu1 %759 }
 0x152   :  { %v2798_v5 = vpop.permute.xlu0 %452 }
 0x153   :  { %3708 = vst [vmem:[#allocation85_spill] sm:$0xff] %v2798_v5  ;;  %1098 = vperm.xlu0 %2010, %v1016_v7   ;;  %v1025_v7 = vld [vmem:[%s3619_s2 + $0x128] sm:$0xff] }
 0x154   :  { %1240 = vperm.xlu1 %2008, %v1022_v63  }
 0x155   :  { %v2800_v9 = vpop.permute.xlu1 %769 }
 0x156   :  { %v2805_v1 = vpop.permute.xlu0 %462 }
 0x157   :  { %3709 = vst [vmem:[#allocation86_spill] sm:$0xff] %v2805_v1  ;;  %1108 = vperm.xlu0 %2010, %v1018_v40   ;;  %v1024_v1 = vld [vmem:[%s3619_s2 + $0x120] sm:$0xff] }
 0x158   :  { %1245 = vperm.xlu1 %2008, %v1023_v57   ;;  %v1027_v57 = vld [vmem:[%s3619_s2 + $0x138] sm:$0xff] }
 0x159   :  { %v2810_v8 = vpop.permute.xlu1 %779 }
 0x15a   :  { %v2815_v63 = vpop.permute.xlu0 %472 }
 0x15b   :  { %3710 = vst [vmem:[#allocation87_spill] sm:$0xff] %v2815_v63  ;;  %1235 = vperm.xlu0 %2010, %v1021_v3   ;;  %v1026_v63 = vld [vmem:[%s3619_s2 + $0x130] sm:$0xff] }
 0x15c   :  { %1255 = vperm.xlu1 %2008, %v1025_v7   ;;  %v1029_v7 = vld [vmem:[%s3619_s2 + $0x148] sm:$0xff] }
 0x15d   :  { %v2820_v40 = vpop.permute.xlu1 %789 }
 0x15e   :  { %v2825_v5 = vpop.permute.xlu0 %552 }
 0x15f   :  { %1250 = vperm.xlu0 %2010, %v1024_v1  }
 0x160   :  { %1265 = vperm.xlu1 %2008, %v1027_v57   ;;  %v1031_v57 = vld [vmem:[%s3619_s2 + $0x158] sm:$0xff] }
 0x161   :  { %v2830_v3 = vpop.permute.xlu1 %799 }
 0x162   :  { %v2835_v6 = vpop.permute.xlu0 %562 }
 0x163   :  { %1260 = vperm.xlu0 %2010, %v1026_v63   ;;  %v632_v28 = vmul.f32 %v2926_v20, %v2835_v6  ;;  %v1370_v6 = vld [vmem:[%s3620_s3 + $0x170] sm:$0xff] }
 0x164   :  { %1275 = vperm.xlu1 %2008, %v1029_v7   ;;  %v1033_v7 = vld [vmem:[%s3619_s2 + $0x168] sm:$0xff] }
 0x165   :  { %v2840_v1 = vpop.permute.xlu1 %809 }
 0x166   :  { %v2845_v13 = vpop.permute.xlu0 %572 }
 0x167   :  { %1270 = vperm.xlu0 %2010, %v1028_v29  }
 0x168   :  { %1285 = vperm.xlu1 %2008, %v1031_v57   ;;  %v1035_v57 = vld [vmem:[%s3619_s2 + $0x178] sm:$0xff] }
 0x169   :  { %v2850_v63 = vpop.permute.xlu1 %819 }
 0x16a   :  { %3711 = vst [vmem:[#allocation88_spill] sm:$0xff] %v2850_v63  ;;  %v2855_v33 = vpop.permute.xlu0 %582  ;;  %v1034_v63 = vld [vmem:[%s3619_s2 + $0x170] sm:$0xff] }
 0x16b   :  { %1280 = vperm.xlu0 %2010, %v1030_v15  }
 0x16c   :  { %1295 = vperm.xlu1 %2008, %v1033_v7   ;;  %v1357_v7 = vld [vmem:[%s3620_s3 + $0x108] sm:$0xff] }
 0x16d   :  { %v2860_v29 = vpop.permute.xlu1 %893 }
 0x16e   :  { %v2865_v45 = vpop.permute.xlu0 %592 }
 0x16f   :  { %1290 = vperm.xlu0 %2010, %v1032_v34  }
 0x170   :  { %1305 = vperm.xlu1 %2008, %v1035_v57   ;;  %v1359_v57 = vld [vmem:[%s3620_s3 + $0x118] sm:$0xff] }
 0x171   :  { %v2870_v15 = vpop.permute.xlu1 %903 }
 0x172   :  { %v2875_v4 = vpop.permute.xlu0 %602 }
 0x173   :  { %1300 = vperm.xlu0 %2010, %v1034_v63  }
 0x174   :  { %1379 = vperm.xlu1 %2008, %v1357_v7   ;;  %v1361_v7 = vld [vmem:[%s3620_s3 + $0x128] sm:$0xff] }
 0x175   :  { %v2880_v34 = vpop.permute.xlu1 %913 }
 0x176   :  { %v2885_v2 = vpop.permute.xlu0 %612 }
 0x177   :  { %1374 = vperm.xlu0 %2010, %v1356_v0  }
 0x178   :  { %1389 = vperm.xlu1 %2008, %v1359_v57   ;;  %v1363_v57 = vld [vmem:[%s3620_s3 + $0x138] sm:$0xff] }
 0x179   :  { %v2890_v63 = vpop.permute.xlu1 %923 }
 0x17a   :  { %v2895_v49 = vpop.permute.xlu0 %622 }
 0x17b   :  { %1384 = vperm.xlu0 %2010, %v1358_v23   ;;  %v1365_v23 = vld [vmem:[%s3620_s3 + $0x148] sm:$0xff] }
 0x17c   :  { %1399 = vperm.xlu1 %2008, %v1361_v7  }
 0x17d   :  { %v2900_v0 = vpop.permute.xlu1 %933 }
 0x17e   :  { %3712 = vst [vmem:[#allocation89_spill] sm:$0xff] %v2900_v0  ;;  %v750_v62 = vpop.permute.xlu0 %749  ;;  %v2975_v0 = vld [vmem:[%s3618_s1 + $0x188] sm:$0xff] }
 0x17f   :  { %1394 = vperm.xlu0 %2010, %v1360_v41   ;;  %v1367_v41 = vld [vmem:[%s3620_s3 + $0x158] sm:$0xff] }
 0x180   :  { %1409 = vperm.xlu1 %2008, %v1363_v57  }
 0x181   :  { %v2908_v21 = vpop.permute.xlu1 %943 }
 0x182   :  { %3713 = vst [vmem:[#allocation90_spill] sm:$0xff] %v2908_v21  ;;  %v765_v7 = vpop.permute.xlu0 %764 }
 0x183   :  { %1404 = vperm.xlu0 %2010, %v1362_v61   ;;  %v1366_v61 = vld [vmem:[%s3620_s3 + $0x150] sm:$0xff] }
 0x184   :  { %1419 = vperm.xlu1 %2008, %v1365_v23   ;;  %v630_v23 = vmul.f32 %v2926_v20, %v2825_v5  ;;  %v1368_v5 = vld [vmem:[%s3620_s3 + $0x160] sm:$0xff] }
 0x185   :  { %v2916_v58 = vpop.permute.xlu1 %953 }
 0x186   :  { %3714 = vst [vmem:[#allocation91_spill] sm:$0xff] %v2916_v58  ;;  %v2921_v57 = vpop.permute.xlu0 %774 }
 0x187   :  { %1414 = vperm.xlu0 %2010, %v1364_v25   ;;  %v2941_v25 = vld [vmem:[%s3617_s0 + $0x1] ss:$0 sm:$0xff] }
 0x188   :  { %1429 = vperm.xlu1 %2008, %v1367_v41   ;;  %v710_v41 = vmul.f32 %v2941_v25, %v2391_v16  ;;  %v711_v31 = vmul.f32 %v2941_v25, %v2713_v30  ;;  %v1371_v16 = vld [vmem:[%s3620_s3 + $0x178] sm:$0xff] }
 0x189   :  { %v2933_v17 = vpop.permute.xlu1 %963 }
 0x18a   :  { %3715 = vst [vmem:[#allocation92_spill] sm:$0xff] %v2933_v17  ;;  %v2943_v59 = vpop.permute.xlu0 %784  ;;  %v631_v17 = vmul.f32 %v2926_v20, %v2645_v24  ;;  %v726_v58 = vadd.f32 %v710_v41, %v630_v23  ;;  %v633_v24 = vmul.f32 %v2926_v20, %v2655_v11 }
 0x18b   :  { %1424 = vperm.xlu0 %2010, %v1366_v61  }
 0x18c   :  { %1439 = vperm.xlu1 %2008, %v1369_v60   ;;  %v712_v60 = vmul.f32 %v2941_v25, %v2721_v32  ;;  %v727_v61 = vadd.f32 %v711_v31, %v631_v17  ;;  %v822_v17 = vadd.f32 %v2781_v18, %v726_v58  ;;  %v713_v31 = vmul.f32 %v2941_v25, %v2399_v19 }
 0x18d   :  { %v2956_v21 = vpop.permute.xlu1 %1043  ;;  %v634_v32 = vmul.f32 %v2926_v20, %v2845_v13 }
 0x18e   :  { %3716 = vst [vmem:[#allocation93_spill] sm:$0xff] %v2956_v21  ;;  %v2961_v30 = vpop.permute.xlu0 %794  ;;  %v728_v23 = vadd.f32 %v712_v60, %v632_v28  ;;  %v823_v41 = vadd.f32 %v750_v62, %v727_v61  ;;  %v635_v62 = vmul.f32 %v2926_v20, %v2665_v55  ;;  %v729_v28 = vadd.f32 %v713_v31, %v633_v24 }
 0x18f   :  { %1434 = vperm.xlu0 %2010, %v1368_v5   ;;  %v714_v5 = vmul.f32 %v2941_v25, %v2729_v14  ;;  %v838_v18 = vmul.f32 0.01, %v822_v17  ;;  %v715_v60 = vmul.f32 %v2941_v25, %v2407_v22  ;;  %v636_v55 = vmul.f32 %v2926_v20, %v2855_v33  ;;  %v3008_v22 = vld [vmem:[%s3618_s1 + $0x190] sm:$0xff] }
 0x190   :  { %1449 = vperm.xlu1 %2008, %v1371_v16   ;;  %v839_v16 = vmul.f32 0.01, %v823_v41  ;;  %v824_v19 = vadd.f32 %v2785_v54, %v728_v23  ;;  %v825_v13 = vadd.f32 %v2793_v36, %v729_v28  ;;  %v637_v14 = vmul.f32 %v2926_v20, %v2673_v56 }
 0x191   :  { %v2970_v21 = vpop.permute.xlu1 %1053  ;;  %v730_v24 = vadd.f32 %v714_v5, %v634_v32  ;;  %v731_v54 = vadd.f32 %v715_v60, %v635_v62  ;;  %v854_v31 = vmax.f32 %v822_v17, %v838_v18  ;;  %v717_v56 = vmul.f32 %v2941_v25, %v2420_v27  ;;  %v3026_v27 = vld [vmem:[%s3618_s1 + $0x1a0] sm:$0xff] }
 0x192   :  { %v2980_v11 = vpop.permute.xlu0 %804  ;;  %v855_v36 = vmax.f32 %v823_v41, %v839_v16  ;;  %v841_v32 = vmul.f32 0.01, %v825_v13  ;;  %v718_v41 = vmul.f32 %v2941_v25, %v2749_v37 }
 0x193   :  { %1444 = vperm.xlu0 %2010, %v1370_v6   ;;  %v716_v6 = vmul.f32 %v2941_v25, %v2739_v12  ;;  %v826_v23 = vadd.f32 %v765_v7, %v730_v24  ;;  %v827_v12 = vadd.f32 %v2800_v9, %v731_v54  ;;  %v639_v7 = vmul.f32 %v2926_v20, %v2681_v39 }
 0x194   :  { %1529 = vperm.xlu1 %2008, %v2975_v0   ;;  %v733_v17 = vadd.f32 %v717_v56, %v637_v14  ;;  %v967_v16 = vmul.f32 %v2860_v29, %v855_v36  ;;  %v719_v39 = vmul.f32 %v2941_v25, %v2433_v35  ;;  %v640_v14 = vmul.f32 %v2926_v20, %v2875_v4  ;;  %v3047_v4 = vld [vmem:[%s3618_s1 + $0x1b0] sm:$0xff] }
 0x195   :  { %v2989_v58 = vpop.permute.xlu1 %1063  ;;  %v732_v28 = vadd.f32 %v716_v6, %v636_v55  ;;  %v842_v9 = vmul.f32 0.01, %v826_v23  ;;  %v843_v37 = vmul.f32 0.01, %v827_v12  ;;  %v641_v29 = vmul.f32 %v2926_v20, %v2689_v47 }
 0x196   :  { %v2995_v61 = vpop.permute.xlu0 %814  ;;  %v829_v55 = vadd.f32 %v2810_v8, %v733_v17  ;;  %v735_v35 = vadd.f32 %v719_v39, %v639_v7 }
 0x197   :  { %1524 = vperm.xlu0 %2010, %v2272_v42   ;;  %v840_v42 = vmul.f32 0.01, %v824_v19  ;;  %v858_v47 = vmax.f32 %v826_v23, %v842_v9  ;;  %v722_v23 = vmul.f32 %v2941_v25, %v2764_v38  ;;  %v723_v38 = vmul.f32 %v2941_v25, %v2459_v51  ;;  %v3085_v51 = vld [vmem:[%s3618_s1 + $0x1d0] sm:$0xff] }
 0x198   :  { %1539 = vperm.xlu1 %2008, %v2281_v44   ;;  %v638_v44 = vmul.f32 %v2926_v20, %v2865_v45  ;;  %v828_v45 = vadd.f32 %v2921_v57, %v732_v28  ;;  %v720_v57 = vmul.f32 %v2941_v25, %v2757_v10  ;;  %v721_v10 = vmul.f32 %v2941_v25, %v2446_v43 }
 0x199   :  { %v3010_v33 = vpop.permute.xlu1 %1073  ;;  %v856_v60 = vmax.f32 %v824_v19, %v840_v42  ;;  %v845_v56 = vmul.f32 0.01, %v829_v55 }
 0x19a   :  { %v889_v62 = vpop.permute.xlu0 %888  ;;  %v734_v6 = vadd.f32 %v718_v41, %v638_v44  ;;  %v844_v8 = vmul.f32 0.01, %v828_v45  ;;  %v736_v44 = vadd.f32 %v720_v57, %v640_v14  ;;  %v737_v43 = vadd.f32 %v721_v10, %v641_v29 }
 0x19b   :  { %v966_v5 = vmul.f32 %v889_v62, %v854_v31  ;;  %1534 = vperm.xlu0 %2010, %v3008_v22   ;;  %v642_v62 = vmul.f32 %v2926_v20, %v2885_v2  ;;  %v3067_v2 = vld [vmem:[%s3618_s1 + $0x1c0] sm:$0xff] }
 0x19c   :  { %1549 = vperm.xlu1 %2008, %v2290_v46   ;;  %v857_v46 = vmax.f32 %v825_v13, %v841_v32  ;;  %v830_v13 = vadd.f32 %v2943_v59, %v734_v6  ;;  %v859_v32 = vmax.f32 %v827_v12, %v843_v37  ;;  %v643_v59 = vmul.f32 %v2926_v20, %v2697_v53 }
 0x19d   :  { %v3030_v18 = vpop.permute.xlu1 %1083  ;;  %v982_v54 = vadd.f32 %v967_v16, %v966_v5  ;;  %v832_v12 = vadd.f32 %v2961_v30, %v736_v44  ;;  %v860_v53 = vmax.f32 %v828_v45, %v844_v8  ;;  %v861_v16 = vmax.f32 %v829_v55, %v845_v56  ;;  %v3099_v8 = vld [vmem:[%s3618_s1 + $0x1e0] sm:$0xff]  ;;  %v2013_v44 = vld [vmem:[%s3618_s1 + $0x1f8] sm:$0xff] }
 0x19e   :  { %v899_v24 = vpop.permute.xlu0 %898  ;;  %v969_v19 = vmul.f32 %v2870_v15, %v857_v46  ;;  %v831_v15 = vadd.f32 %v2820_v40, %v735_v35  ;;  %v971_v7 = vmul.f32 %v2880_v34, %v859_v32  ;;  %v846_v40 = vmul.f32 0.01, %v830_v13  ;;  %v3717_v35 = vld [vmem:[#allocation89_spill] sm:$0xff] }
 0x19f   :  { %v968_v31 = vmul.f32 %v899_v24, %v856_v60  ;;  %1544 = vperm.xlu0 %2010, %v3026_v27   ;;  %v833_v34 = vadd.f32 %v2830_v3, %v737_v43  ;;  %v644_v60 = vmul.f32 %v2926_v20, %v2895_v49  ;;  %v738_v39 = vadd.f32 %v722_v23, %v642_v62 }
 0x1a0   :  { %1559 = vperm.xlu1 %2008, %v2299_v48   ;;  %v847_v9 = vmul.f32 0.01, %v831_v15  ;;  %v724_v30 = vmul.f32 %v2941_v25, %v2771_v26  ;;  %v739_v45 = vadd.f32 %v723_v38, %v643_v59  ;;  %v973_v24 = vmul.f32 %v2890_v63, %v861_v16 }
 0x1a1   :  { %v983_v36 = vadd.f32 %v982_v54, %v968_v31  ;;  %v3050_v42 = vpop.permute.xlu1 %1093  ;;  %v848_v3 = vmul.f32 0.01, %v832_v12  ;;  %v834_v49 = vadd.f32 %v2980_v11, %v738_v39  ;;  %v862_v6 = vmax.f32 %v830_v13, %v846_v40  ;;  %v2012_v11 = vld [vmem:[%s3618_s1 + $0x1e8] sm:$0xff] }
 0x1a2   :  { %v909_v48 = vpop.permute.xlu0 %908  ;;  %v849_v54 = vmul.f32 0.01, %v833_v34  ;;  %v863_v31 = vmax.f32 %v831_v15, %v847_v9  ;;  %v835_v29 = vadd.f32 %v2840_v1, %v739_v45  ;;  %v740_v63 = vadd.f32 %v724_v30, %v644_v60  ;;  %v1507_v9 = vld [vmem:[%s3619_s2 + $0x188] sm:$0xff]  ;;  %v1510_v45 = vld [vmem:[%s3619_s2 + $0x1a0] sm:$0xff] }
 0x1a3   :  { %v970_v28 = vmul.f32 %v909_v48, %v858_v47  ;;  %v984_v5 = vadd.f32 %v983_v36, %v969_v19  ;;  %1554 = vperm.xlu0 %2010, %v3047_v4   ;;  %v850_v13 = vmul.f32 0.01, %v834_v49  ;;  %v864_v47 = vmax.f32 %v832_v12, %v848_v3 }
 0x1a4   :  { %1569 = vperm.xlu1 %2008, %v2308_v50   ;;  %v975_v19 = vmul.f32 %v3717_v35, %v863_v31  ;;  %v836_v1 = vadd.f32 %v2995_v61, %v740_v63  ;;  %v851_v15 = vmul.f32 0.01, %v835_v29  ;;  %v865_v32 = vmax.f32 %v833_v34, %v849_v54  ;;  %v3111_v61 = vld [vmem:[%s3618_s1 + $0x1f0] sm:$0xff] }
 0x1a5   :  { %v985_v41 = vadd.f32 %v984_v5, %v970_v28  ;;  %v3070_v17 = vpop.permute.xlu1 %1103  ;;  %v3718_v28 = vld [vmem:[#allocation90_spill] sm:$0xff]  ;;  %v866_v43 = vmax.f32 %v834_v49, %v850_v13  ;;  %v3719_v38 = vmov 1   ;;  %v3720_v34 = vld [vmem:[#allocation91_spill] sm:$0xff] }
 0x1a6   :  { %v919_v50 = vpop.permute.xlu0 %918  ;;  %v977_v5 = vmul.f32 %v3718_v28, %v865_v32  ;;  %v852_v59 = vmul.f32 0.01, %v836_v1  ;;  %v867_v12 = vmax.f32 %v835_v29, %v851_v15  ;;  %v3722_v54 = vld [vmem:[#allocation7_spill] sm:$0xff]  ;;  %v3726_v13 = vld [vmem:[#allocation6_spill] sm:$0xff]  ;;  %v3727_v32 = vld [vmem:[#allocation72_spill] sm:$0xff] }
 0x1a7   :  { %v972_v37 = vmul.f32 %v919_v50, %v860_v53  ;;  %v986_v46 = vadd.f32 %v985_v41, %v971_v7  ;;  %1564 = vperm.xlu0 %2010, %v3067_v2   ;;  %v224_v31 = vmul.f32 %v2941_v25, %v3722_v54  ;;  %v3725_v35 = vld [vmem:[#allocation23_spill] sm:$0xff]  ;;  %v1845_v28 = vld [vmem:[%s3620_s3 + $0x198] sm:$0xff] }
 0x1a8   :  { %1579 = vperm.xlu1 %2008, %v2317_v52   ;;  %v979_v16 = vmul.f32 %v3720_v34, %v867_v12  ;;  %v868_v60 = vmax.f32 %v836_v1, %v852_v59  ;;  %v142_v1 = vmul.f32 %v2926_v20, %v3726_v13  ;;  %v3730_v59 = vld [vmem:[#allocation9_spill] sm:$0xff] }
 0x1a9   :  { %v987_v55 = vadd.f32 %v986_v46, %v972_v37  ;;  %v3088_v14 = vpop.permute.xlu1 %1113 }
 0x1aa   :  { %v929_v26 = vpop.permute.xlu0 %928 }
 0x1ab   :  { %v974_v57 = vmul.f32 %v929_v26, %v862_v6  ;;  %v988_v52 = vadd.f32 %v987_v55, %v973_v24  ;;  %1574 = vperm.xlu0 %2010, %v3085_v51   ;;  %v1843_v6 = vld [vmem:[%s3620_s3 + $0x188] sm:$0xff]  ;;  %v3723_v26 = vld [vmem:[#allocation65_spill] sm:$0xff] }
 0x1ac   :  { %1589 = vperm.xlu1 %2008, %v2012_v11  }
 0x1ad   :  { %v989_v36 = vadd.f32 %v988_v52, %v974_v57  ;;  %v3724_v57 = vld [vmem:[#allocation22_spill] sm:$0xff] }
 0x1ae   :  { %v3102_v10 = vpop.permute.xlu1 %1137  ;;  %v939_v56 = vpop.permute.xlu0 %938  ;;  %v225_v52 = vmul.f32 %v2941_v25, %v3724_v57 }
 0x1af   :  { %v976_v48 = vmul.f32 %v939_v56, %v864_v47  ;;  %v990_v62 = vadd.f32 %v989_v36, %v975_v19  ;;  %1584 = vperm.xlu0 %2010, %v3099_v8   ;;  %v226_v19 = vmul.f32 %v2941_v25, %v3725_v35 }
 0x1b0   :  { %1599 = vperm.xlu1 %2008, %v2013_v44  }
 0x1b1   :  { %v991_v23 = vadd.f32 %v990_v62, %v976_v48  ;;  %v242_v15 = vadd.f32 %v226_v19, %v142_v1  ;;  %v3728_v62 = vld [vmem:[#allocation32_spill] sm:$0xff] }
 0x1b2   :  { %v3114_v7 = vpop.permute.xlu1 %1141  ;;  %v949_v40 = vpop.permute.xlu0 %948  ;;  %v3738_v19 = vld [vmem:[#allocation80_spill] sm:$0xff] }
 0x1b3   :  { %v978_v41 = vmul.f32 %v949_v40, %v866_v43  ;;  %v992_v53 = vadd.f32 %v991_v23, %v977_v5  ;;  %1594 = vperm.xlu0 %2010, %v3111_v61   ;;  %v3729_v5 = vld [vmem:[#allocation8_spill] sm:$0xff]  ;;  %v227_v23 = vmul.f32 %v2941_v25, %v3730_v59  ;;  %v3731_v43 = vld [vmem:[#allocation34_spill] sm:$0xff]  ;;  %v3742_v59 = vld [vmem:[#allocation25_spill] sm:$0xff] }
 0x1b4   :  { %2009 = vset.pattern.permute.xlu1 %v3719_v38  ;;  %v338_v40 = vadd.f32 %v3731_v43, %v242_v15 }
 0x1b5   :  { %v993_v50 = vadd.f32 %v992_v53, %v978_v41  ;;  %1623 = vperm.xlu1 %2009, %v2975_v0   ;;  %v3721_v0 = vld [vmem:[#allocation63_spill] sm:$0xff]  ;;  %v3732_v53 = vld [vmem:[#allocation66_spill] sm:$0xff] }
 0x1b6   :  { %v3123_v39 = vpop.permute.xlu1 %1149  ;;  %v959_v37 = vpop.permute.xlu0 %958  ;;  %v140_v55 = vmul.f32 %v2926_v20, %v3721_v0  ;;  %v144_v38 = vmul.f32 %v2926_v20, %v3732_v53 }
 0x1b7   :  { %v980_v46 = vmul.f32 %v959_v37, %v868_v60  ;;  %v994_v30 = vadd.f32 %v993_v50, %v979_v16  ;;  %1721 = vperm.xlu0 %2010, %v1507_v9   ;;  %v1846_v16 = vld [vmem:[%s3620_s3 + $0x1a0] sm:$0xff]  ;;  %v354_v37 = vmul.f32 0.01, %v338_v40 }
 0x1b8   :  { %v240_v11 = vadd.f32 %v224_v31, %v140_v55  ;;  %v1847_v31 = vld [vmem:[%s3620_s3 + $0x1a8] sm:$0xff] }
 0x1b9   :  { %v3128_v24 = vadd.f32 %v994_v30, %v980_v46  ;;  %1627 = vperm.xlu1 %2009, %v3008_v22   ;;  %v141_v22 = vmul.f32 %v2926_v20, %v3723_v26  ;;  %v3735_v26 = vld [vmem:[#allocation10_spill] sm:$0xff] }
 0x1ba   :  { %v3131_v3 = vpop.permute.xlu1 %1157  ;;  %v3133_v49 = vpop.permute.xlu0 %1038  ;;  %v336_v44 = vadd.f32 %v3728_v62, %v240_v11  ;;  %v3740_v62 = vld [vmem:[#allocation50_spill] sm:$0xff] }
 0x1bb   :  { %1736 = vperm.xlu0 %2010, %v1510_v45   ;;  %v241_v36 = vadd.f32 %v225_v52, %v141_v22  ;;  %v3734_v45 = vld [vmem:[#allocation36_spill] sm:$0xff]  ;;  %v3736_v22 = vld [vmem:[#allocation11_spill] sm:$0xff]  ;;  %v3737_v52 = vld [vmem:[#allocation74_spill] sm:$0xff] }
 0x1bc   :  { %v352_v34 = vmul.f32 0.01, %v336_v44  ;;  %v229_v57 = vmul.f32 %v2941_v25, %v3736_v22  ;;  %v3748_v22 = vld [vmem:[#allocation75_spill] sm:$0xff] }
 0x1bd   :  { %1635 = vperm.xlu1 %2009, %v3026_v27   ;;  %v1844_v27 = vld [vmem:[%s3620_s3 + $0x190] sm:$0xff]  ;;  %v337_v48 = vadd.f32 %v3727_v32, %v241_v36 }
 0x1be   :  { %v3145_v29 = vpop.permute.xlu1 %1165  ;;  %v1049_v63 = vpop.permute.xlu0 %1048  ;;  %v368_v54 = vmax.f32 %v336_v44, %v352_v34  ;;  %v3739_v32 = vld [vmem:[#allocation67_spill] sm:$0xff] }
 0x1bf   :  { %1865 = vperm.xlu0 %2010, %v1843_v6   ;;  %v353_v9 = vmul.f32 0.01, %v337_v48  ;;  %v1118_v13 = vmul.f32 %v2926_v20, %v1049_v63  ;;  %v1848_v63 = vld [vmem:[%s3620_s3 + $0x1b0] sm:$0xff] }
 0x1c0   :  { %v480_v11 = vmul.f32 %v3738_v19, %v368_v54  ;;  %v1849_v54 = vld [vmem:[%s3620_s3 + $0x1b8] sm:$0xff] }
 0x1c1   :  { %1643 = vperm.xlu1 %2009, %v3047_v4   ;;  %v143_v4 = vmul.f32 %v2926_v20, %v3729_v5  ;;  %v369_v55 = vmax.f32 %v337_v48, %v353_v9  ;;  %v146_v48 = vmul.f32 %v2926_v20, %v3739_v32  ;;  %v1198_v5 = vmul.f32 %v2941_v25, %v3114_v7  ;;  %v3743_v9 = vld [vmem:[#allocation12_spill] sm:$0xff] }
 0x1c2   :  { %v3157_v47 = vpop.permute.xlu1 %1173  ;;  %v3159_v56 = vpop.permute.xlu0 %1058  ;;  %v147_v34 = vmul.f32 %v2926_v20, %v3743_v9 }
 0x1c3   :  { %1870 = vperm.xlu0 %2010, %v1844_v27   ;;  %v243_v50 = vadd.f32 %v227_v23, %v143_v4  ;;  %v370_v27 = vmax.f32 %v338_v40, %v354_v37  ;;  %v481_v44 = vmul.f32 %v3740_v62, %v369_v55  ;;  %v230_v23 = vmul.f32 %v2941_v25, %v3742_v59 }
 0x1c5   :  { %1651 = vperm.xlu1 %2009, %v3067_v2   ;;  %v3733_v2 = vld [vmem:[#allocation24_spill] sm:$0xff]  ;;  %v339_v0 = vadd.f32 %v3734_v45, %v243_v50  ;;  %v496_v40 = vadd.f32 %v481_v44, %v480_v11  ;;  %v3745_v50 = vld [vmem:[#allocation38_spill] sm:$0xff]  ;;  %v246_v45 = vadd.f32 %v230_v23, %v146_v48  ;;  %v1120_v23 = vmul.f32 %v2926_v20, %v3159_v56  ;;  %v3759_v56 = vld [vmem:[#allocation21_spill] sm:$0xff] }
 0x1c6   :  { %v3172_v12 = vpop.permute.xlu1 %1181  ;;  %v3174_v41 = vpop.permute.xlu0 %1068  ;;  %v228_v60 = vmul.f32 %v2941_v25, %v3733_v2  ;;  %v3750_v48 = vld [vmem:[#allocation82_spill] sm:$0xff] }
 0x1c7   :  { %1875 = vperm.xlu0 %2010, %v1845_v28   ;;  %v355_v36 = vmul.f32 0.01, %v339_v0  ;;  %v3741_v28 = vld [vmem:[#allocation81_spill] sm:$0xff] }
 0x1c8   :  { %v244_v6 = vadd.f32 %v228_v60, %v144_v38  ;;  %v1214_v38 = vadd.f32 %v1198_v5, %v1118_v13  ;;  %v3752_v5 = vld [vmem:[#allocation15_spill] sm:$0xff] }
 0x1c9   :  { %1659 = vperm.xlu1 %2009, %v3085_v51   ;;  %v145_v51 = vmul.f32 %v2926_v20, %v3735_v26  ;;  %v371_v37 = vmax.f32 %v339_v0, %v355_v36  ;;  %v3747_v26 = vld [vmem:[#allocation52_spill] sm:$0xff] }
 0x1ca   :  { %v3184_v46 = vpop.permute.xlu1 %1189  ;;  %v3186_v30 = vpop.permute.xlu0 %1078  ;;  %v340_v35 = vadd.f32 %v3737_v52, %v244_v6  ;;  %v3749_v36 = vld [vmem:[#allocation68_spill] sm:$0xff] }
 0x1cb   :  { %1880 = vperm.xlu0 %2010, %v1846_v16   ;;  %v245_v4 = vadd.f32 %v229_v57, %v145_v51  ;;  %v3744_v16 = vld [vmem:[#allocation13_spill] sm:$0xff]  ;;  %v483_v51 = vmul.f32 %v3747_v26, %v371_v37  ;;  %v342_v57 = vadd.f32 %v3748_v22, %v246_v45  ;;  %v148_v32 = vmul.f32 %v2926_v20, %v3749_v36  ;;  %v3758_v37 = vld [vmem:[#allocation20_spill] sm:$0xff] }
 0x1cc   :  { %v356_v43 = vmul.f32 0.01, %v340_v35  ;;  %v231_v7 = vmul.f32 %v2941_v25, %v3744_v16  ;;  %v155_v45 = vmul.f32 %v2926_v20, %v3758_v37  ;;  %v1509_v26 = vld [vmem:[%s3619_s2 + $0x198] sm:$0xff]  ;;  %v1124_v37 = vmul.f32 %v2926_v20, %v3186_v30 }
 0x1cd   :  { %1667 = vperm.xlu1 %2009, %v3099_v8   ;;  %v482_v8 = vmul.f32 %v3741_v28, %v370_v27  ;;  %v341_v2 = vadd.f32 %v3745_v50, %v245_v4  ;;  %v1508_v27 = vld [vmem:[%s3619_s2 + $0x190] sm:$0xff]  ;;  %v3751_v28 = vld [vmem:[#allocation14_spill] sm:$0xff] }
 0x1ce   :  { %v3200_v1 = vpop.permute.xlu0 %1088  ;;  %v372_v52 = vmax.f32 %v340_v35, %v356_v43  ;;  %v247_v11 = vadd.f32 %v231_v7, %v147_v34  ;;  %v1850_v35 = vld [vmem:[%s3620_s3 + $0x1c0] sm:$0xff]  ;;  %v3753_v4 = vld [vmem:[#allocation16_spill] sm:$0xff]  ;;  %v358_v7 = vmul.f32 0.01, %v342_v57 }
 0x1cf   :  { %v3202_v15 = vpop.permute.xlu1 %1230  ;;  %1885 = vperm.xlu0 %2010, %v1847_v31   ;;  %v497_v55 = vadd.f32 %v496_v40, %v482_v8  ;;  %v3746_v31 = vmov 0   ;;  %v357_v13 = vmul.f32 0.01, %v341_v2  ;;  %v149_v8 = vmul.f32 %v2926_v20, %v3751_v28  ;;  %v3754_v43 = vld [vmem:[#allocation17_spill] sm:$0xff]  ;;  %v3756_v34 = vld [vmem:[#allocation26_spill] sm:$0xff] }
 0x1d0   :  { %v484_v62 = vmul.f32 %v3750_v48, %v372_v52  ;;  %v151_v59 = vmul.f32 %v2926_v20, %v3753_v4  ;;  %v235_v40 = vmul.f32 %v2941_v25, %v3754_v43  ;;  %v232_v16 = vmul.f32 %v2941_v25, %v3756_v34  ;;  %v1851_v48 = vld [vmem:[%s3620_s3 + $0x1c8] sm:$0xff] }
 0x1d1   :  { %1675 = vperm.xlu1 %2009, %v3111_v61   ;;  %v1506_v61 = vld [vmem:[%s3619_s2 + $0x180] sm:$0xff]  ;;  %v498_v44 = vadd.f32 %v497_v55, %v483_v51  ;;  %v239_v55 = vmul.f32 %v2941_v25, %v3759_v56  ;;  %v3760_v51 = vld [vmem:[#allocation40_spill] sm:$0xff]  ;;  %v373_v52 = vmax.f32 %v341_v2, %v357_v13 }
 0x1d2   :  { %v3216_v53 = vpop.permute.xlu0 %1098  ;;  %v343_v22 = vadd.f32 %v3760_v51, %v247_v11  ;;  %v251_v4 = vadd.f32 %v235_v40, %v151_v59  ;;  %v3764_v59 = vld [vmem:[#allocation83_spill] sm:$0xff]  ;;  %v3767_v56 = vld [vmem:[#allocation28_spill] sm:$0xff]  ;;  %v3769_v51 = vld [vmem:[#allocation30_spill] sm:$0xff] }
 0x1d3   :  { %v1241_v60 = vpop.permute.xlu1 %1240  ;;  %1890 = vperm.xlu0 %2010, %v1848_v63   ;;  %v233_v63 = vmul.f32 %v2941_v25, %v3752_v5  ;;  %v499_v36 = vadd.f32 %v498_v44, %v484_v62  ;;  %v3286_v13 = vadd.f32 %v239_v55, %v155_v45  ;;  %v236_v55 = vmul.f32 %v2941_v25, %v3767_v56  ;;  %v3776_v56 = vld [vmem:[#allocation70_spill] sm:$0xff] }
 0x1d4   :  { %v3226_v6 = vadd.f32 %v1241_v60, %v1214_v38  ;;  %v3755_v38 = vld [vmem:[#allocation18_spill] sm:$0xff]  ;;  %v3757_v60 = vld [vmem:[#allocation19_spill] sm:$0xff] }
 0x1d5   :  { %2011 = vset.pattern.permute.xlu1 %v3746_v31  ;;  %v153_v9 = vmul.f32 %v2926_v20, %v3755_v38  ;;  %v249_v28 = vadd.f32 %v233_v63, %v149_v8  ;;  %v3762_v38 = vld [vmem:[#allocation76_spill] sm:$0xff]  ;;  %v359_v8 = vmul.f32 0.01, %v343_v22 }
 0x1d6   :  { %1716 = vperm.xlu1 %2011, %v1506_v61   ;;  %v3234_v19 = vpop.permute.xlu0 %1108  ;;  %v237_v61 = vmul.f32 %v2941_v25, %v3757_v60  ;;  %v374_v60 = vmax.f32 %v342_v57, %v358_v7  ;;  %v3763_v57 = vld [vmem:[#allocation69_spill] sm:$0xff]  ;;  %v3766_v7 = vld [vmem:[#allocation42_spill] sm:$0xff] }
 0x1d7   :  { %v3236_v0 = vpop.permute.xlu1 %1245  ;;  %1895 = vperm.xlu0 %2010, %v1849_v54   ;;  %v1200_v54 = vmul.f32 %v2941_v25, %v3123_v39  ;;  %v1122_v39 = vmul.f32 %v2926_v20, %v3174_v41  ;;  %v1842_v41 = vld [vmem:[%s3620_s3 + $0x180] sm:$0xff]  ;;  %v150_v63 = vmul.f32 %v2926_v20, %v3763_v57  ;;  %v1853_v57 = vld [vmem:[%s3620_s3 + $0x1d8] sm:$0xff] }
 0x1d8   :  { %v3284_v2 = vadd.f32 %v237_v61, %v153_v9  ;;  %v3765_v9 = vld [vmem:[#allocation27_spill] sm:$0xff]  ;;  %v3306_v61 = vadd.f32 %v3766_v7, %v249_v28 }
 0x1d9   :  { %v1216_v5 = vadd.f32 %v1200_v54, %v1120_v23  ;;  %v486_v23 = vmul.f32 %v3764_v59, %v374_v60  ;;  %v3768_v54 = vld [vmem:[#allocation29_spill] sm:$0xff]  ;;  %v375_v60 = vmax.f32 %v343_v22, %v359_v8  ;;  %v3772_v59 = vld [vmem:[#allocation44_spill] sm:$0xff] }
 0x1da   :  { %1726 = vperm.xlu1 %2011, %v1508_v27   ;;  %v3261_v50 = vpop.permute.xlu0 %1235  ;;  %v248_v27 = vadd.f32 %v232_v16, %v148_v32  ;;  %v1202_v32 = vmul.f32 %v2941_v25, %v3131_v3  ;;  %v1852_v3 = vld [vmem:[%s3620_s3 + $0x1d0] sm:$0xff]  ;;  %v234_v16 = vmul.f32 %v2941_v25, %v3765_v9  ;;  %v3340_v9 = vadd.f32 %v3772_v59, %v251_v4  ;;  %v3774_v8 = vld [vmem:[#allocation77_spill] sm:$0xff] }
 0x1db   :  { %v3271_v31 = vpop.permute.xlu1 %1255  ;;  %1900 = vperm.xlu0 %2010, %v1850_v35   ;;  %v3761_v35 = vld [vmem:[#allocation54_spill] sm:$0xff]  ;;  %v1116_v4 = vmul.f32 %v2926_v20, %v3133_v49 }
 0x1dc   :  { %v485_v43 = vmul.f32 %v3761_v35, %v373_v52  ;;  %v344_v34 = vadd.f32 %v3762_v38, %v248_v27  ;;  %v1218_v45 = vadd.f32 %v1202_v32, %v1122_v39  ;;  %v3318_v52 = vmul.f32 %v2941_v25, %v3769_v51  ;;  %v1511_v38 = vld [vmem:[%s3619_s2 + $0x1a8] sm:$0xff]  ;;  %v1854_v49 = vld [vmem:[%s3620_s3 + $0x1e0] sm:$0xff] }
 0x1dd   :  { %v1204_v39 = vmul.f32 %v2941_v25, %v3145_v29  ;;  %v361_v29 = vmul.f32 0.01, %v3306_v61 }
 0x1de   :  { %1731 = vperm.xlu1 %2011, %v1509_v26   ;;  %v1251_v11 = vpop.permute.xlu0 %1250  ;;  %v500_v40 = vadd.f32 %v499_v36, %v485_v43  ;;  %v3314_v26 = vmul.f32 %v2941_v25, %v3768_v54  ;;  %v360_v27 = vmul.f32 0.01, %v344_v34  ;;  %v152_v54 = vmul.f32 %v2926_v20, %v3776_v56 }
 0x1df   :  { %v3290_v62 = vadd.f32 %v1251_v11, %v1216_v5  ;;  %v3292_v44 = vpop.permute.xlu1 %1265  ;;  %1905 = vperm.xlu0 %2010, %v1851_v48   ;;  %v3770_v48 = vld [vmem:[#allocation31_spill] sm:$0xff]  ;;  %v3771_v5 = vld [vmem:[#allocation33_spill] sm:$0xff]  ;;  %v250_v11 = vadd.f32 %v234_v16, %v150_v63  ;;  %v1220_v7 = vadd.f32 %v1204_v39, %v1124_v37 }
 0x1e0   :  { %v1196_v28 = vmul.f32 %v2941_v25, %v3770_v48  ;;  %v1199_v30 = vmul.f32 %v2941_v25, %v3771_v5  ;;  %v501_v32 = vadd.f32 %v500_v40, %v486_v23  ;;  %v376_v23 = vmax.f32 %v344_v34, %v360_v27  ;;  %v3775_v40 = vld [vmem:[#allocation93_spill] sm:$0xff]  ;;  %v1512_v34 = vld [vmem:[%s3619_s2 + $0x1b0] sm:$0xff] }
 0x1e1   :  { %v346_v63 = vadd.f32 %v3774_v8, %v250_v11  ;;  %v3777_v27 = vld [vmem:[#allocation84_spill] sm:$0xff]  ;;  %v1119_v5 = vmul.f32 %v2926_v20, %v2970_v21  ;;  %v377_v21 = vmax.f32 %v3306_v61, %v361_v29  ;;  %v252_v8 = vadd.f32 %v236_v55, %v152_v54 }
 0x1e2   :  { %1860 = vperm.xlu1 %2011, %v1842_v41   ;;  %v1261_v36 = vpop.permute.xlu0 %1260  ;;  %v1197_v41 = vmul.f32 %v2941_v25, %v3102_v10  ;;  %v1117_v10 = vmul.f32 %v2926_v20, %v3775_v40  ;;  %v1208_v40 = vmul.f32 %v2941_v25, %v3172_v12  ;;  %v363_v61 = vmul.f32 0.01, %v3340_v9  ;;  %v1856_v12 = vld [vmem:[%s3620_s3 + $0x1f0] sm:$0xff] }
 0x1e3   :  { %v3326_v35 = vadd.f32 %v1261_v36, %v1218_v45  ;;  %v3328_v43 = vpop.permute.xlu1 %1275  ;;  %1910 = vperm.xlu0 %2010, %v1852_v3   ;;  %v1126_v3 = vmul.f32 %v2926_v20, %v3200_v1  ;;  %v3773_v45 = vld [vmem:[#allocation56_spill] sm:$0xff]  ;;  %v1206_v1 = vmul.f32 %v2941_v25, %v3157_v47  ;;  %v488_v36 = vmul.f32 %v3777_v27, %v376_v23  ;;  %v3778_v47 = vld [vmem:[#allocation35_spill] sm:$0xff] }
 0x1e4   :  { %v487_v22 = vmul.f32 %v3773_v45, %v375_v60  ;;  %v1213_v39 = vadd.f32 %v1197_v41, %v1117_v10  ;;  %v3779_v60 = vld [vmem:[#allocation37_spill] sm:$0xff]  ;;  %v362_v41 = vmul.f32 0.01, %v346_v63  ;;  %v1212_v23 = vadd.f32 %v1196_v28, %v1116_v4  ;;  %v3781_v28 = vld [vmem:[#allocation78_spill] sm:$0xff] }
 0x1e5   :  { %v1203_v11 = vmul.f32 %v2941_v25, %v3779_v60  ;;  %v1222_v59 = vadd.f32 %v1206_v1, %v1126_v3  ;;  %v1513_v3 = vld [vmem:[%s3619_s2 + $0x1b8] sm:$0xff]  ;;  %v1215_v55 = vadd.f32 %v1199_v30, %v1119_v5  ;;  %v1130_v54 = vmul.f32 %v2926_v20, %v3234_v19  ;;  %v3782_v1 = vld [vmem:[#allocation58_spill] sm:$0xff] }
 0x1e6   :  { %1741 = vperm.xlu1 %2011, %v1511_v38   ;;  %v1271_v16 = vpop.permute.xlu0 %1270  ;;  %v502_v48 = vadd.f32 %v501_v32, %v487_v22  ;;  %v1201_v38 = vmul.f32 %v2941_v25, %v3778_v47  ;;  %v1309_v45 = vadd.f32 %v3261_v50, %v1213_v39  ;;  %v1121_v50 = vmul.f32 %v2926_v20, %v2989_v58  ;;  %v3783_v30 = vld [vmem:[#allocation46_spill] sm:$0xff]  ;;  %v3784_v39 = vld [vmem:[#allocation71_spill] sm:$0xff] }
 0x1e7   :  { %v3354_v37 = vadd.f32 %v1271_v16, %v1220_v7  ;;  %v3356_v51 = vpop.permute.xlu1 %1285  ;;  %1915 = vperm.xlu0 %2010, %v1853_v57   ;;  %v1128_v57 = vmul.f32 %v2926_v20, %v3216_v53  ;;  %v3780_v7 = vld [vmem:[#allocation39_spill] sm:$0xff]  ;;  %v348_v16 = vadd.f32 %v3781_v28, %v252_v8  ;;  %v1308_v56 = vadd.f32 %v3202_v15, %v1212_v23 }
 0x1e8   :  { %v3375_v32 = vmul.f32 %v2941_v25, %v3780_v7  ;;  %v503_v29 = vadd.f32 %v502_v48, %v488_v36  ;;  %v378_v27 = vmax.f32 %v346_v63, %v362_v41  ;;  %v1311_v36 = vadd.f32 %v3236_v0, %v1215_v55  ;;  %v1514_v0 = vld [vmem:[%s3619_s2 + $0x1c0] sm:$0xff] }
 0x1e9   :  { %v1224_v4 = vadd.f32 %v1208_v40, %v1128_v57  ;;  %v1325_v48 = vmul.f32 0.01, %v1309_v45  ;;  %v3402_v5 = vadd.f32 %v3783_v30, %v3284_v2  ;;  %v1210_v15 = vmul.f32 %v2941_v25, %v3184_v46  ;;  %v3785_v63 = vld [vmem:[#allocation85_spill] sm:$0xff] }
 0x1ea   :  { %1746 = vperm.xlu1 %2011, %v1512_v34   ;;  %v1281_v22 = vpop.permute.xlu0 %1280  ;;  %v489_v34 = vmul.f32 %v3782_v1, %v377_v21  ;;  %v490_v60 = vmul.f32 %v3785_v63, %v378_v27  ;;  %v1123_v2 = vmul.f32 %v2926_v20, %v3010_v33  ;;  %v3786_v7 = vld [vmem:[#allocation41_spill] sm:$0xff]  ;;  %v364_v46 = vmul.f32 0.01, %v348_v16 }
 0x1eb   :  { %v3381_v10 = vadd.f32 %v1281_v22, %v1222_v59  ;;  %v3383_v53 = vpop.permute.xlu1 %1295  ;;  %1920 = vperm.xlu0 %2010, %v1854_v49   ;;  %v154_v49 = vmul.f32 %v2926_v20, %v3784_v39  ;;  %v1217_v59 = vadd.f32 %v1201_v38, %v1121_v50  ;;  %v1207_v21 = vmul.f32 %v2941_v25, %v3786_v7 }
 0x1ec   :  { %v504_v57 = vadd.f32 %v503_v29, %v489_v34  ;;  %v1324_v41 = vmul.f32 0.01, %v1308_v56  ;;  %v1226_v22 = vadd.f32 %v1210_v15, %v1130_v54  ;;  %v379_v8 = vmax.f32 %v3340_v9, %v363_v61  ;;  %v1515_v9 = vld [vmem:[%s3619_s2 + $0x1c8] sm:$0xff] }
 0x1ed   :  { %v1327_v23 = vmul.f32 0.01, %v1311_v36  ;;  %v1313_v40 = vadd.f32 %v3271_v31, %v1217_v59  ;;  %v1341_v55 = vmax.f32 %v1309_v45, %v1325_v48  ;;  %v365_v29 = vmul.f32 0.01, %v3402_v5 }
 0x1ee   :  { %1751 = vperm.xlu1 %2011, %v1513_v3   ;;  %v1291_v58 = vpop.permute.xlu0 %1290  ;;  %v254_v38 = vadd.f32 %v3318_v52, %v154_v49  ;;  %v505_v61 = vadd.f32 %v504_v57, %v490_v60  ;;  %v1125_v31 = vmul.f32 %v2926_v20, %v3030_v18  ;;  %v1219_v54 = vadd.f32 %v1203_v11, %v1123_v2  ;;  %v3789_v52 = vld [vmem:[#allocation60_spill] sm:$0xff]  ;;  %v3791_v18 = vld [vmem:[#allocation86_spill] sm:$0xff] }
 0x1ef   :  { %v3408_v19 = vadd.f32 %v1291_v58, %v1224_v4  ;;  %v3410_v47 = vpop.permute.xlu1 %1305  ;;  %1930 = vperm.xlu0 %2010, %v1856_v12   ;;  %v3787_v12 = vld [vmem:[#allocation73_spill] sm:$0xff]  ;;  %v3788_v4 = vld [vmem:[#allocation79_spill] sm:$0xff]  ;;  %v380_v34 = vmax.f32 %v348_v16, %v364_v46  ;;  %v1326_v27 = vmul.f32 0.01, %v3226_v6  ;;  %v1340_v48 = vmax.f32 %v1308_v56, %v1324_v41 }
 0x1f0   :  { %v645_v33 = vmul.f32 %v2926_v20, %v3787_v12  ;;  %v350_v1 = vadd.f32 %v3788_v4, %v254_v38  ;;  %v491_v58 = vmul.f32 %v3789_v52, %v379_v8  ;;  %v1329_v30 = vmul.f32 0.01, %v1313_v40  ;;  %v1516_v56 = vld [vmem:[%s3619_s2 + $0x1d0] sm:$0xff] }
 0x1f1   :  { %v1315_v39 = vadd.f32 %v3292_v44, %v1219_v54  ;;  %v1343_v15 = vmax.f32 %v1311_v36, %v1327_v23  ;;  %v492_v11 = vmul.f32 %v3791_v18, %v380_v34  ;;  %v1127_v44 = vmul.f32 %v2926_v20, %v3050_v42  ;;  %v3793_v12 = vld [vmem:[#allocation88_spill] sm:$0xff] }
 0x1f2   :  { %1756 = vperm.xlu1 %2011, %v1514_v0   ;;  %v1301_v3 = vpop.permute.xlu0 %1300  ;;  %v3790_v0 = vld [vmem:[#allocation48_spill] sm:$0xff]  ;;  %v741_v60 = vadd.f32 %v3314_v26, %v645_v33  ;;  %v506_v2 = vadd.f32 %v505_v61, %v491_v58  ;;  %v1221_v36 = vadd.f32 %v3375_v32, %v1125_v31  ;;  %v366_v7 = vmul.f32 0.01, %v350_v1  ;;  %v3792_v26 = vld [vmem:[#allocation43_spill] sm:$0xff] }
 0x1f3   :  { %v3426_v50 = vadd.f32 %v1301_v3, %v1226_v22  ;;  %v1380_v28 = vpop.permute.xlu1 %1379  ;;  %v3439_v63 = vadd.f32 %v3790_v0, %v3286_v13  ;;  %v1328_v13 = vmul.f32 0.01, %v3290_v62  ;;  %v1342_v41 = vmax.f32 %v3226_v6, %v1326_v27  ;;  %v1517_v6 = vld [vmem:[%s3619_s2 + $0x1d8] sm:$0xff]  ;;  %v3795_v58 = vld [vmem:[#allocation87_spill] sm:$0xff] }
 0x1f4   :  { %v1453_v45 = vmul.f32 %v1380_v28, %v1341_v55  ;;  %v1209_v22 = vmul.f32 %v2941_v25, %v3792_v26  ;;  %v1331_v8 = vmul.f32 0.01, %v1315_v39  ;;  %v1317_v23 = vadd.f32 %v3328_v43, %v1221_v36 }
 0x1f5   :  { %v1345_v55 = vmax.f32 %v1313_v40, %v1329_v30  ;;  %v367_v42 = vmul.f32 0.01, %v3439_v63  ;;  %v381_v32 = vmax.f32 %v3402_v5, %v365_v29  ;;  %v837_v33 = vadd.f32 %v3793_v12, %v741_v60  ;;  %v3794_v29 = vld [vmem:[#allocation62_spill] sm:$0xff] }
 0x1f6   :  { %1761 = vperm.xlu1 %2011, %v1515_v9   ;;  %v1375_v49 = vpop.permute.xlu0 %1374  ;;  %v507_v9 = vadd.f32 %v506_v2, %v492_v11  ;;  %v1129_v61 = vmul.f32 %v2926_v20, %v3070_v17  ;;  %v1223_v43 = vadd.f32 %v1207_v21, %v1127_v44  ;;  %v382_v54 = vmax.f32 %v350_v1, %v366_v7  ;;  %v1518_v1 = vld [vmem:[%s3619_s2 + $0x1e0] sm:$0xff] }
 0x1f7   :  { %v1452_v16 = vmul.f32 %v1375_v49, %v1340_v48  ;;  %v1390_v57 = vpop.permute.xlu1 %1389  ;;  %v1330_v40 = vmul.f32 0.01, %v3326_v35  ;;  %v1344_v5 = vmax.f32 %v3290_v62, %v1328_v13  ;;  %v493_v4 = vmul.f32 %v3794_v29, %v381_v32 }
 0x1f8   :  { %v1455_v59 = vmul.f32 %v1390_v57, %v1343_v15  ;;  %v1333_v34 = vmul.f32 0.01, %v1317_v23  ;;  %v1319_v27 = vadd.f32 %v3356_v51, %v1223_v43  ;;  %v1347_v52 = vmax.f32 %v1315_v39, %v1331_v8 }
 0x1f9   :  { %v1468_v46 = vadd.f32 %v1453_v45, %v1452_v16  ;;  %v494_v30 = vmul.f32 %v3795_v58, %v382_v54  ;;  %v853_v49 = vmul.f32 0.01, %v837_v33  ;;  %v508_v0 = vadd.f32 %v507_v9, %v493_v4  ;;  %v3796_v16 = vld [vmem:[#allocation45_spill] sm:$0xff]  ;;  %v1520_v9 = vld [vmem:[%s3619_s2 + $0x1f0] sm:$0xff] }
 0x1fa   :  { %1766 = vperm.xlu1 %2011, %v1516_v56   ;;  %v1385_v3 = vpop.permute.xlu0 %1384  ;;  %v1131_v62 = vmul.f32 %v2926_v20, %v3088_v14  ;;  %v1225_v18 = vadd.f32 %v1209_v22, %v1129_v61  ;;  %v1332_v51 = vmul.f32 0.01, %v3354_v37  ;;  %v1346_v39 = vmax.f32 %v3326_v35, %v1330_v40  ;;  %v1519_v14 = vld [vmem:[%s3619_s2 + $0x1e8] sm:$0xff] }
 0x1fb   :  { %v1454_v38 = vmul.f32 %v1385_v3, %v1342_v41  ;;  %v1400_v28 = vpop.permute.xlu1 %1399  ;;  %v1211_v57 = vmul.f32 %v2941_v25, %v3796_v16  ;;  %v1335_v56 = vmul.f32 0.01, %v1319_v27  ;;  %v1349_v36 = vmax.f32 %v1317_v23, %v1333_v34  ;;  %v3797_v25 = vld [vmem:[#allocation92_spill] sm:$0xff] }
 0x1fc   :  { %v1457_v31 = vmul.f32 %v1400_v28, %v1345_v55  ;;  %v1321_v2 = vadd.f32 %v3383_v53, %v1225_v18  ;;  %v509_v35 = vadd.f32 %v508_v0, %v494_v30  ;;  %v1334_v53 = vmul.f32 0.01, %v3381_v10  ;;  %v1521_v34 = vld [vmem:[%s3619_s2 + $0x1f8] sm:$0xff]  ;;  %v1855_v0 = vld [vmem:[%s3620_s3 + $0x1e8] sm:$0xff] }
 0x1fd   :  { %v1469_v45 = vadd.f32 %v1468_v46, %v1454_v38  ;;  %v383_v46 = vmax.f32 %v3439_v63, %v367_v42  ;;  %v1227_v41 = vadd.f32 %v1211_v57, %v1131_v62  ;;  %v1348_v23 = vmax.f32 %v3354_v37, %v1332_v51 }
 0x1fe   :  { %1771 = vperm.xlu1 %2011, %v1517_v6   ;;  %v1395_v48 = vpop.permute.xlu0 %1394  ;;  %v1337_v3 = vmul.f32 0.01, %v1321_v2  ;;  %v1351_v12 = vmax.f32 %v1319_v27, %v1335_v56  ;;  %v1336_v37 = vmul.f32 0.01, %v3408_v19  ;;  %v1857_v56 = vld [vmem:[%s3620_s3 + $0x1f8] sm:$0xff] }
 0x1ff   :  { %v1456_v17 = vmul.f32 %v1395_v48, %v1344_v5  ;;  %v1470_v21 = vadd.f32 %v1469_v45, %v1455_v59  ;;  %v1410_v15 = vpop.permute.xlu1 %1409  ;;  %v869_v59 = vmax.f32 %v837_v33, %v853_v49  ;;  %v1323_v55 = vadd.f32 %v3410_v47, %v1227_v41  ;;  %v3798_v33 = vld [vmem:[#allocation64_spill] sm:$0xff] }
 0x200   :  { %v1459_v11 = vmul.f32 %v1410_v15, %v1347_v52  ;;  %v495_v38 = vmul.f32 %v3798_v33, %v383_v46  ;;  %v1350_v47 = vmax.f32 %v3381_v10, %v1334_v53  ;;  %v1353_v45 = vmax.f32 %v1321_v2, %v1337_v3 }
 0x201   :  { %v1471_v60 = vadd.f32 %v1470_v21, %v1456_v17  ;;  %v981_v22 = vmul.f32 %v3797_v25, %v869_v59  ;;  %v1339_v54 = vmul.f32 0.01, %v1323_v55  ;;  %v1338_v52 = vmul.f32 0.01, %v3426_v50 }
 0x202   :  { %1776 = vperm.xlu1 %2011, %v1518_v1   ;;  %v1405_v44 = vpop.permute.xlu0 %1404  ;;  %v510_v43 = vadd.f32 %v509_v35, %v495_v38  ;;  %v1352_v30 = vmax.f32 %v3408_v19, %v1336_v37 }
 0x203   :  { %v1458_v7 = vmul.f32 %v1405_v44, %v1346_v39  ;;  %v1472_v13 = vadd.f32 %v1471_v60, %v1457_v31  ;;  %v1420_v20 = vpop.permute.xlu1 %1419  ;;  %v996_v63 = vadd.f32 %v3128_v24, %v981_v22  ;;  %v1355_v49 = vmax.f32 %v1323_v55, %v1339_v54 }
 0x204   :  { %v1461_v26 = vmul.f32 %v1420_v20, %v1349_v36  ;;  %v511_v48 = vrot.slane %v510_v43, 4  ;;  %v1354_v51 = vmax.f32 %v3426_v50, %v1338_v52 }
 0x205   :  { %v1473_v8 = vadd.f32 %v1472_v13, %v1458_v7  ;;  %v997_v5 = vrot.slane %v996_v63, 4 }
 0x206   :  { %1781 = vperm.xlu1 %2011, %v1519_v14   ;;  %v1415_v32 = vpop.permute.xlu0 %1414  ;;  %v512_v18 = vadd.f32 %v511_v48, %v510_v43  ;;  %v3537_v48 = vld [vmem:[%s3617_s0 + $0x1] ss:$0 sm:$0xff] }
 0x207   :  { %v1460_v42 = vmul.f32 %v1415_v32, %v1348_v23  ;;  %v1474_v28 = vadd.f32 %v1473_v8, %v1459_v11  ;;  %v1430_v6 = vpop.permute.xlu1 %1429  ;;  %v998_v17 = vadd.f32 %v997_v5, %v996_v63 }
 0x208   :  { %v1463_v61 = vmul.f32 %v1430_v6, %v1351_v12  ;;  %v513_v2 = vrot.slane %v512_v18, 2 }
 0x209   :  { %v1475_v31 = vadd.f32 %v1474_v28, %v1460_v42  ;;  %v999_v39 = vrot.slane %v998_v17, 2 }
 0x20a   :  { %1786 = vperm.xlu1 %2011, %v1520_v9   ;;  %v1425_v40 = vpop.permute.xlu0 %1424  ;;  %v514_v20 = vadd.f32 %v513_v2, %v512_v18  ;;  %v3800_v2 = vld [vmem:[#allocation49_spill] sm:$0xff] }
 0x20b   :  { %v1462_v24 = vmul.f32 %v1425_v40, %v1350_v47  ;;  %v1476_v29 = vadd.f32 %v1475_v31, %v1461_v26  ;;  %v1440_v4 = vpop.permute.xlu1 %1439  ;;  %v1000_v59 = vadd.f32 %v999_v39, %v998_v17 }
 0x20c   :  { %v1465_v27 = vmul.f32 %v1440_v4, %v1353_v45  ;;  %v515_v26 = vrot.slane %v514_v20, 1 }
 0x20d   :  { %v1477_v58 = vadd.f32 %v1476_v29, %v1462_v24  ;;  %v1001_v46 = vrot.slane %v1000_v59, 1 }
 0x20e   :  { %1791 = vperm.xlu1 %2011, %v1521_v34   ;;  %v1435_v10 = vpop.permute.xlu0 %1434  ;;  %v516_v3 = vadd.f32 %v515_v26, %v514_v20 }
 0x20f   :  { %v1464_v21 = vmul.f32 %v1435_v10, %v1352_v30  ;;  %v1478_v15 = vadd.f32 %v1477_v58, %v1463_v61  ;;  %v1450_v1 = vpop.permute.xlu1 %1449  ;;  %v1002_v53 = vadd.f32 %v1001_v46, %v1000_v59  ;;  %v3543_v58 = vld [vmem:[%s3617_s0] ss:$0 sm:$0xff] }
 0x210   :  { %v1467_v62 = vmul.f32 %v1450_v1, %v1355_v49 }
 0x211   :  { %v1479_v11 = vadd.f32 %v1478_v15, %v1464_v21  ;;  %v1003_v33 = vadd.f32 %v1002_v53, %v516_v3  ;;  %v3799_v15 = vld [vmem:[#allocation47_spill] sm:$0xff] }
 0x212   :  { %1925 = vperm.xlu1 %2011, %v1855_v0   ;;  %v1445_v60 = vpop.permute.xlu0 %1444  ;;  %v1682_v1 = vmul.f32 %v3537_v48, %v3799_v15 }
 0x213   :  { %v1466_v19 = vmul.f32 %v1445_v60, %v1354_v51  ;;  %v1480_v16 = vadd.f32 %v1479_v11, %v1465_v27  ;;  %v1530_v57 = vpop.permute.xlu1 %1529 }
 0x214   :  { %v1603_v30 = vmul.f32 %v3543_v58, %v1530_v57 }
 0x215   :  { %v1481_v44 = vadd.f32 %v1480_v16, %v1466_v19 }
 0x216   :  { %1935 = vperm.xlu1 %2011, %v1857_v56   ;;  %v1525_v36 = vpop.permute.xlu0 %1524 }
 0x217   :  { %v1482_v7 = vadd.f32 %v1481_v44, %v1467_v62  ;;  %v1540_v13 = vpop.permute.xlu1 %1539  ;;  %v1602_v49 = vmul.f32 %v3543_v58, %v1525_v36  ;;  %v1685_v44 = vmul.f32 %v3537_v48, %v3800_v2 }
 0x218   :  { %v1605_v60 = vmul.f32 %v3543_v58, %v1540_v13 }
 0x219   :  { %v1483_v14 = vrot.slane %v1482_v7, 4  ;;  %v1698_v51 = vadd.f32 %v1682_v1, %v1602_v49 }
 0x21a   :  { %v1535_v50 = vpop.permute.xlu0 %1534  ;;  %v1701_v46 = vadd.f32 %v1685_v44, %v1605_v60 }
 0x21b   :  { %v1484_v35 = vadd.f32 %v1483_v14, %v1482_v7  ;;  %v3504_v41 = vpop.permute.xlu1 %1549  ;;  %v1604_v18 = vmul.f32 %v3543_v58, %v1535_v50 }
 0x21d   :  { %v1485_v25 = vrot.slane %v1484_v35, 2 }
 0x21e   :  { %v1545_v22 = vpop.permute.xlu0 %1544 }
 0x21f   :  { %v1486_v8 = vadd.f32 %v1485_v25, %v1484_v35  ;;  %v3506_v23 = vpop.permute.xlu1 %1559  ;;  %v1606_v36 = vmul.f32 %v3543_v58, %v1545_v22  ;;  %v1607_v25 = vmul.f32 %v3543_v58, %v3504_v41 }
 0x221   :  { %v1487_v55 = vrot.slane %v1486_v8, 1 }
 0x222   :  { %v3508_v32 = vpop.permute.xlu0 %1554 }
 0x223   :  { %v3510_v12 = vpop.permute.xlu1 %1569  ;;  %v1488_v38 = vadd.f32 %v1487_v55, %v1486_v8 }
 0x225   :  { %v3512_v63 = vadd.f32 %v1488_v38, %v1003_v33  ;;  %v3801_v38 = vld [vmem:[#allocation51_spill] sm:$0xff] }
 0x226   :  { %v3514_v42 = vpop.permute.xlu0 %1564  ;;  %v1687_v22 = vmul.f32 %v3537_v48, %v3801_v38 }
 0x227   :  { %v3516_v28 = vpop.permute.xlu1 %1579 }
 0x22a   :  { %v3518_v6 = vpop.permute.xlu0 %1574 }
 0x22b   :  { %v3520_v9 = vpop.permute.xlu1 %1589 }
 0x22e   :  { %v3522_v61 = vpop.permute.xlu0 %1584 }
 0x22f   :  { %v3524_v43 = vpop.permute.xlu1 %1599 }
 0x232   :  { %v3526_v31 = vpop.permute.xlu0 %1594 }
 0x234   :  { %v1624_v37 = vpop.permute.xlu1 %1623 }
 0x235   :  { %v1683_v52 = vmul.f32 %v3537_v48, %v1624_v37 }
 0x236   :  { %v1722_v54 = vpop.permute.xlu0 %1721 }
 0x237   :  { %v1699_v17 = vadd.f32 %v1683_v52, %v1603_v30  ;;  %v1703_v52 = vadd.f32 %v1687_v22, %v1607_v25  ;;  %v3803_v25 = vld [vmem:[#allocation55_spill] sm:$0xff] }
 0x238   :  { %v1628_v47 = vpop.permute.xlu1 %1627 }
 0x239   :  { %v1684_v0 = vmul.f32 %v3537_v48, %v1628_v47  ;;  %v1795_v11 = vadd.f32 %v1722_v54, %v1699_v17 }
 0x23a   :  { %v1737_v5 = vpop.permute.xlu0 %1736 }
 0x23b   :  { %v1700_v16 = vadd.f32 %v1684_v0, %v1604_v18  ;;  %v1811_v59 = vmul.f32 0.01, %v1795_v11 }
 0x23c   :  { %v1636_v40 = vpop.permute.xlu1 %1635 }
 0x23d   :  { %v1686_v39 = vmul.f32 %v3537_v48, %v1636_v40  ;;  %v1827_v26 = vmax.f32 %v1795_v11, %v1811_v59  ;;  %v1609_v11 = vmul.f32 %v3543_v58, %v3506_v23 }
 0x23e   :  { %v1866_v29 = vpop.permute.xlu0 %1865 }
 0x23f   :  { %v1702_v20 = vadd.f32 %v1686_v39, %v1606_v36  ;;  %v1939_v47 = vmul.f32 %v1866_v29, %v1827_v26 }
 0x240   :  { %v1644_v45 = vpop.permute.xlu1 %1643 }
 0x241   :  { %v1798_v8 = vadd.f32 %v1737_v5, %v1702_v20  ;;  %v1688_v30 = vmul.f32 %v3537_v48, %v1644_v45  ;;  %v1608_v5 = vmul.f32 %v3543_v58, %v3508_v32  ;;  %v1610_v20 = vmul.f32 %v3543_v58, %v3514_v42 }
 0x242   :  { %v1871_v27 = vpop.permute.xlu0 %1870 }
 0x243   :  { %v1814_v49 = vmul.f32 0.01, %v1798_v8  ;;  %v1704_v39 = vadd.f32 %v1688_v30, %v1608_v5  ;;  %v1613_v30 = vmul.f32 %v3543_v58, %v3516_v28  ;;  %v1614_v28 = vmul.f32 %v3543_v58, %v3522_v61 }
 0x244   :  { %v3528_v24 = vpop.permute.xlu1 %1651 }
 0x245   :  { %v1830_v29 = vmax.f32 %v1798_v8, %v1814_v49  ;;  %v1690_v32 = vmul.f32 %v3537_v48, %v3528_v24  ;;  %v1691_v8 = vmul.f32 %v3537_v48, %v3803_v25 }
 0x246   :  { %v1876_v21 = vpop.permute.xlu0 %1875 }
 0x248   :  { %v3530_v4 = vpop.permute.xlu1 %1659 }
 0x249   :  { %v1692_v42 = vmul.f32 %v3537_v48, %v3530_v4 }
 0x24a   :  { %v1881_v57 = vpop.permute.xlu0 %1880 }
 0x24c   :  { %v3532_v34 = vpop.permute.xlu1 %1667 }
 0x24e   :  { %v1886_v53 = vpop.permute.xlu0 %1885 }
 0x250   :  { %v3546_v10 = vpop.permute.xlu1 %1675 }
 0x252   :  { %v1891_v1 = vpop.permute.xlu0 %1890 }
 0x255   :  { %v1717_v62 = vpop.permute.xlu1 %1716 }
 0x256   :  { %v1794_v19 = vadd.f32 %v1717_v62, %v1698_v51  ;;  %v1896_v44 = vpop.permute.xlu0 %1895 }
 0x258   :  { %v1810_v14 = vmul.f32 0.01, %v1794_v19 }
 0x259   :  { %v1727_v56 = vpop.permute.xlu1 %1726 }
 0x25a   :  { %v1796_v7 = vadd.f32 %v1727_v56, %v1700_v16  ;;  %v1826_v33 = vmax.f32 %v1794_v19, %v1810_v14  ;;  %v3802_v19 = vld [vmem:[#allocation53_spill] sm:$0xff]  ;;  %v1942_v16 = vmul.f32 %v1881_v57, %v1830_v29  ;;  %v1611_v57 = vmul.f32 %v3543_v58, %v3510_v12  ;;  %v1901_v24 = vpop.permute.xlu0 %1900 }
 0x25b   :  { %v1689_v45 = vmul.f32 %v3537_v48, %v3802_v19  ;;  %v1612_v12 = vmul.f32 %v3543_v58, %v3518_v6  ;;  %v1694_v6 = vmul.f32 %v3537_v48, %v3532_v34 }
 0x25c   :  { %v1812_v50 = vmul.f32 0.01, %v1796_v7 }
 0x25d   :  { %v1732_v35 = vpop.permute.xlu1 %1731  ;;  %v1705_v36 = vadd.f32 %v1689_v45, %v1609_v11 }
 0x25e   :  { %v1797_v13 = vadd.f32 %v1732_v35, %v1701_v46  ;;  %v1828_v3 = vmax.f32 %v1796_v7, %v1812_v50  ;;  %v1906_v49 = vpop.permute.xlu0 %1905 }
 0x260   :  { %v1813_v55 = vmul.f32 0.01, %v1797_v13  ;;  %v1940_v17 = vmul.f32 %v1871_v27, %v1828_v3 }
 0x261   :  { %v1861_v37 = vpop.permute.xlu1 %1860 }
 0x262   :  { %v1829_v54 = vmax.f32 %v1797_v13, %v1813_v55  ;;  %v1938_v40 = vmul.f32 %v1861_v37, %v1826_v33  ;;  %v1706_v13 = vadd.f32 %v1690_v32, %v1610_v20  ;;  %v1707_v33 = vadd.f32 %v1691_v8, %v1611_v57  ;;  %v3806_v8 = vld [vmem:[#allocation61_spill] sm:$0xff] }
 0x264   :  { %v1954_v15 = vadd.f32 %v1939_v47, %v1938_v40  ;;  %v1941_v0 = vmul.f32 %v1876_v21, %v1829_v54 }
 0x265   :  { %v1742_v41 = vpop.permute.xlu1 %1741 }
 0x266   :  { %v1955_v62 = vadd.f32 %v1954_v15, %v1940_v17  ;;  %v1799_v18 = vadd.f32 %v1742_v41, %v1703_v52  ;;  %v3804_v41 = vld [vmem:[#allocation57_spill] sm:$0xff] }
 0x267   :  { %v1693_v4 = vmul.f32 %v3537_v48, %v3804_v41 }
 0x268   :  { %v1956_v51 = vadd.f32 %v1955_v62, %v1941_v0  ;;  %v1815_v60 = vmul.f32 0.01, %v1799_v18 }
 0x269   :  { %v1747_v27 = vpop.permute.xlu1 %1746 }
 0x26a   :  { %v1831_v56 = vmax.f32 %v1799_v18, %v1815_v60  ;;  %v1800_v2 = vadd.f32 %v1747_v27, %v1704_v39  ;;  %v1957_v59 = vadd.f32 %v1956_v51, %v1942_v16  ;;  %v1709_v18 = vadd.f32 %v1693_v4, %v1613_v30  ;;  %v1911_v60 = vpop.permute.xlu0 %1910 }
 0x26c   :  { %v1943_v21 = vmul.f32 %v1886_v53, %v1831_v56  ;;  %v1816_v7 = vmul.f32 0.01, %v1800_v2 }
 0x26d   :  { %v1752_v23 = vpop.permute.xlu1 %1751 }
 0x26e   :  { %v1958_v14 = vadd.f32 %v1957_v59, %v1943_v21  ;;  %v1832_v50 = vmax.f32 %v1800_v2, %v1816_v7  ;;  %v1801_v46 = vadd.f32 %v1752_v23, %v1705_v36  ;;  %v1710_v2 = vadd.f32 %v1694_v6, %v1614_v28  ;;  %v1916_v21 = vpop.permute.xlu0 %1915  ;;  %v3805_v59 = vld [vmem:[#allocation59_spill] sm:$0xff] }
 0x26f   :  { %v1615_v36 = vmul.f32 %v3543_v58, %v3520_v9  ;;  %v1695_v7 = vmul.f32 %v3537_v48, %v3805_v59  ;;  %v1696_v23 = vmul.f32 %v3537_v48, %v3546_v10  ;;  %v1617_v9 = vmul.f32 %v3543_v58, %v3524_v43 }
 0x270   :  { %v1944_v35 = vmul.f32 %v1891_v1, %v1832_v50  ;;  %v1817_v26 = vmul.f32 0.01, %v1801_v46  ;;  %v1708_v1 = vadd.f32 %v1692_v42, %v1612_v12  ;;  %v1616_v50 = vmul.f32 %v3543_v58, %v3526_v31 }
 0x271   :  { %v1757_v53 = vpop.permute.xlu1 %1756  ;;  %v1711_v57 = vadd.f32 %v1695_v7, %v1615_v36  ;;  %v1977_v6 = vstv %s3621_s4 }
 0x272   :  { %v1833_v3 = vmax.f32 %v1801_v46, %v1817_v26  ;;  %v1802_v55 = vadd.f32 %v1757_v53, %v1706_v13  ;;  %v1959_v38 = vadd.f32 %v1958_v14, %v1944_v35  ;;  %v1712_v13 = vadd.f32 %v1696_v23, %v1616_v50  ;;  %v1921_v42 = vpop.permute.xlu0 %1920 }
 0x274   :  { %v1945_v22 = vmul.f32 %v1896_v44, %v1833_v3  ;;  %v1818_v37 = vmul.f32 0.01, %v1802_v55 }
 0x275   :  { %v1762_v47 = vpop.permute.xlu1 %1761 }
 0x276   :  { %v1960_v54 = vadd.f32 %v1959_v38, %v1945_v22  ;;  %v1834_v40 = vmax.f32 %v1802_v55, %v1818_v37  ;;  %v1803_v52 = vadd.f32 %v1762_v47, %v1707_v33 }
 0x278   :  { %v1946_v17 = vmul.f32 %v1901_v24, %v1834_v40  ;;  %v1819_v15 = vmul.f32 0.01, %v1803_v52  ;;  %v1697_v24 = vmul.f32 %v3537_v48, %v3806_v8  ;;  %v1931_v40 = vpop.permute.xlu0 %1930 }
 0x279   :  { %v1767_v5 = vpop.permute.xlu1 %1766 }
 0x27a   :  { %v1835_v0 = vmax.f32 %v1803_v52, %v1819_v15  ;;  %v1804_v62 = vadd.f32 %v1767_v5, %v1708_v1  ;;  %v1961_v11 = vadd.f32 %v1960_v54, %v1946_v17  ;;  %v1713_v33 = vadd.f32 %v1697_v24, %v1617_v9 }
 0x27c   :  { %v1947_v29 = vmul.f32 %v1906_v49, %v1835_v0  ;;  %v1820_v51 = vmul.f32 0.01, %v1804_v62 }
 0x27d   :  { %v1772_v39 = vpop.permute.xlu1 %1771 }
 0x27e   :  { %v1962_v19 = vadd.f32 %v1961_v11, %v1947_v29  ;;  %v1836_v45 = vmax.f32 %v1804_v62, %v1820_v51  ;;  %v1805_v27 = vadd.f32 %v1772_v39, %v1709_v18 }
 0x280   :  { %v1948_v16 = vmul.f32 %v1911_v60, %v1836_v45  ;;  %v1821_v56 = vmul.f32 0.01, %v1805_v27 }
 0x281   :  { %v1777_v44 = vpop.permute.xlu1 %1776 }
 0x282   :  { %v1837_v32 = vmax.f32 %v1805_v27, %v1821_v56  ;;  %v1806_v34 = vadd.f32 %v1777_v44, %v1710_v2  ;;  %v1963_v61 = vadd.f32 %v1962_v19, %v1948_v16 }
 0x284   :  { %v1949_v20 = vmul.f32 %v1916_v21, %v1837_v32  ;;  %v1822_v46 = vmul.f32 0.01, %v1806_v34 }
 0x285   :  { %v1782_v14 = vpop.permute.xlu1 %1781 }
 0x286   :  { %v1964_v35 = vadd.f32 %v1963_v61, %v1949_v20  ;;  %v1807_v26 = vadd.f32 %v1782_v14, %v1711_v57  ;;  %v1838_v53 = vmax.f32 %v1806_v34, %v1822_v46 }
 0x288   :  { %v1823_v3 = vmul.f32 0.01, %v1807_v26  ;;  %v1950_v31 = vmul.f32 %v1921_v42, %v1838_v53 }
 0x289   :  { %v1787_v25 = vpop.permute.xlu1 %1786 }
 0x28a   :  { %v1808_v10 = vadd.f32 %v1787_v25, %v1712_v13  ;;  %v1839_v12 = vmax.f32 %v1807_v26, %v1823_v3  ;;  %v1965_v58 = vadd.f32 %v1964_v35, %v1950_v31 }
 0x28c   :  { %v1824_v55 = vmul.f32 0.01, %v1808_v10 }
 0x28d   :  { %v1792_v38 = vpop.permute.xlu1 %1791 }
 0x28e   :  { %v1809_v22 = vadd.f32 %v1792_v38, %v1713_v33  ;;  %v1840_v37 = vmax.f32 %v1808_v10, %v1824_v55 }
 0x290   :  { %v1825_v47 = vmul.f32 0.01, %v1809_v22  ;;  %v1952_v52 = vmul.f32 %v1931_v40, %v1840_v37 }
 0x291   :  { %v1926_v54 = vpop.permute.xlu1 %1925 }
 0x292   :  { %v1951_v43 = vmul.f32 %v1926_v54, %v1839_v12  ;;  %v1841_v49 = vmax.f32 %v1809_v22, %v1825_v47 }
 0x294   :  { %v1966_v30 = vadd.f32 %v1965_v58, %v1951_v43 }
 0x295   :  { %v1936_v48 = vpop.permute.xlu1 %1935 }
 0x296   :  { %v1953_v17 = vmul.f32 %v1936_v48, %v1841_v49  ;;  %v1967_v15 = vadd.f32 %v1966_v30, %v1952_v52 }
 0x298   :  { %v1968_v1 = vadd.f32 %v1967_v15, %v1953_v17 }
 0x29a   :  { %v1969_v41 = vrot.slane %v1968_v1, 4 }
 0x29c   :  { %v1970_v4 = vadd.f32 %v1969_v41, %v1968_v1 }
 0x29e   :  { %v1971_v5 = vrot.slane %v1970_v4, 2 }
 0x2a0   :  { %v1972_v0 = vadd.f32 %v1971_v5, %v1970_v4 }
 0x2a2   :  { %v1973_v62 = vrot.slane %v1972_v0, 1 }
 0x2a4   :  { %v1974_v18 = vadd.f32 %v1973_v62, %v1972_v0 }
 0x2a6   :  { %v1975_v11 = vadd.f32 %v1974_v18, %v3512_v63 }
 0x2a8   :  { %v1978_v29 = vadd.f32 %v1977_v6, %v1975_v11 }
 0x2aa   :  { %v1979_v51 = vmul.f32 0.01, %v1978_v29 }
 0x2ac   :  { %v1980_v60 = vmax.f32 %v1978_v29, %v1979_v51 }
 0x2ae   :  { %1981 = vst [vmem:[#allocation3] sm:$0x1] %v1980_v60 }
 0x2af   :  { %2027 = shalt.err (!%p2024_p4)
}
 0x2b0   :  { %s2028_s4 = scalar_lea.hbm %s3622_s5, 16 }
 0x2b1   :  { %p2029_p5 = scmp.ne.s32.totalorder %s3622_s5, %s2028_s4  ;;  %p2032_p6 = scmp.lt.u32.totalorder %s2028_s4, %s3622_s5 }
 0x2b3   :  { %p2034_p7 = pnand %p2032_p6, %p2029_p5 }
 0x2b5   :  { %2037 = shalt.err (!%p2034_p7)
}
 0x2b6   :  { %1991 = dma.vmem_to_hbm [thread:$0]  %s1989_s11, 16, %s3622_s5, [#allocation4]  }
 0x2b7   :  { %2038 = dma.done.wait [#allocation4], 16  }
 0x2b8   :  { %2039 = vsyncadd [#allocation4], 4294967280 }
 0x2b9   :  { %1995 = vsyncpa [#allocation4], 1 }

</bundles_post_ra>
